<compile_context>
chip_gen: v7x
topology: tpu7x:2x2x1
jax: 0.10.0
libtpu: 0.0.40
codegen_flags: <defaults>
</compile_context>

<pallas_src>
import functools
import math

import jax
import jax.numpy as jnp
from jax.experimental import pallas as pl
from jax.experimental.pallas import tpu as pltpu

LN_EPS = 1e-5          # PyTorch nn.LayerNorm / TransformerEncoderLayer default
NEG_INF = -1e30


def _round_up(x, m):
    return ((x + m - 1) // m) * m


def _vmem_limit_bytes():
    # ~3/4 of physical VMEM: ~48 MiB on v7x (64 MiB), 96 MiB on v5e/v6e (128 MiB).
    try:
        cap = int(pltpu.get_tpu_info().vmem_capacity_bytes)
    except Exception:
        cap = 64 * 1024 * 1024
    return min((cap * 3) // 4, 96 * 1024 * 1024)


def _pick_batch_tile(B, S_pad, E, H):
    # Rough f32 bytes of per-sample in-kernel intermediates (activation, qkv,
    # scores, FFN hidden); keep the batch tile's working set well under the
    # scoped VMEM limit so double-buffered layer weights still fit.
    per_sample = 4 * S_pad * (10 * E + H * S_pad)
    budget = 16 * 1024 * 1024
    bt = max(1, min(B, budget // max(per_sample, 1)))
    return int(min(bt, 8))


def _layer_norm(x, gamma, beta):
    mu = jnp.mean(x, axis=-1, keepdims=True)
    var = jnp.mean(jnp.square(x - mu), axis=-1, keepdims=True)
    return (x - mu) * jax.lax.rsqrt(var + LN_EPS) * gamma + beta


# ---------------------------- Pallas kernels ----------------------------

def patch_embed_kernel(p_ref, w_ref, b_ref, o_ref):
    # (tm, C*P*P) @ (C*P*P, E) + (1, E)  ==  Conv2d(stride=patch) patch embed
    o_ref[...] = (
        jnp.dot(p_ref[...], w_ref[...], preferred_element_type=jnp.float32)
        + b_ref[...]
    )


def fused_encoder_kernel(x_ref, wqkv_ref, wo_ref, w1_ref, w2_ref, vec_ref,
                         o_ref, act_ref, *, num_heads, seq_len):
    """All nn.TransformerEncoderLayer's (post-norm, ReLU, eval mode) + final LN.

    grid = (batch_tile, layer).  The (Bt, S_pad, E) activation tile lives in
    VMEM scratch across the whole layer loop; per-layer weights are DMA'd once
    per batch tile; only the normalized CLS rows go back to HBM, on the last
    layer.
    """
    layer = pl.program_id(1)
    num_layers = pl.num_programs(1)

    @pl.when(layer == 0)
    def _():
        act_ref[...] = x_ref[...]           # load this batch tile's sequences

    x3 = act_ref[...]                       # (Bt, S_pad, E) float32
    Bt, S_pad, E = x3.shape
    H = num_heads
    dh = E // H
    BtS = Bt * S_pad

    x = x3.reshape(BtS, E)                  # leading-dim merge (S_pad % 8 == 0)
    x_bf = x.astype(jnp.bfloat16)

    vec = vec_ref[0]                        # (10, 4E) packed per-layer vectors
    bqkv = vec[0:1, :3 * E]
    bo = vec[1:2, :E]
    b1 = vec[2:3, :]
    b2 = vec[3:4, :E]
    g1, be1 = vec[4:5, :E], vec[5:6, :E]
    g2, be2 = vec[6:7, :E], vec[7:8, :E]
    gn, bn = vec[8:9, :E], vec[9:10, :E]

    # --- self attention: ONE dense QKV matmul (scale folded into Q at prep) ---
    qkv = jnp.dot(x_bf, wqkv_ref[0], preferred_element_type=jnp.float32) + bqkv

    def split_heads(base):                  # -> (Bt*H, S_pad, dh) bf16
        parts = [qkv[:, base + h * dh: base + (h + 1) * dh]
                 .reshape(Bt, 1, S_pad, dh) for h in range(H)]
        th = jnp.concatenate(parts, axis=1)             # (Bt, H, S_pad, dh)
        return th.reshape(Bt * H, S_pad, dh).astype(jnp.bfloat16)

    q = split_heads(0 * E)
    k = split_heads(1 * E)
    v = split_heads(2 * E)

    s = jnp.einsum('bqd,bkd->bqk', q, k,
                   preferred_element_type=jnp.float32)  # (Bt*H, S_pad, S_pad)

    # Mask padded key positions (sequence was padded to S_pad).
    kidx = jax.lax.broadcasted_iota(jnp.int32, (1, 1, S_pad), 2)
    s = jnp.where(kidx < seq_len, s, NEG_INF)

    m = jnp.max(s, axis=-1, keepdims=True)
    e = jnp.exp(s - m)
    p = e * pl.reciprocal(jnp.sum(e, axis=-1, keepdims=True), approx=True)

    ctx = jnp.einsum('bqk,bkd->bqd', p.astype(jnp.bfloat16), v,
                     preferred_element_type=jnp.float32)  # (Bt*H, S_pad, dh)

    # Concat heads (lane-dim concat, no transposes) then one dense out-proj.
    ctx4 = ctx.reshape(Bt, H, S_pad, dh)
    ctx_cat = jnp.concatenate([ctx4[:, h] for h in range(H)], axis=-1)
    ctx2 = ctx_cat.reshape(BtS, E)
    attn = jnp.dot(ctx2.astype(jnp.bfloat16), wo_ref[0],
                   preferred_element_type=jnp.float32) + bo

    # TODO(synk): dropout (p=0.1) is stochastic; implemented as identity (eval mode).
    x1 = _layer_norm(x + attn, g1, be1)

    # --- feed forward (ReLU) ---
    h1 = jnp.dot(x1.astype(jnp.bfloat16), w1_ref[0],
                 preferred_element_type=jnp.float32) + b1
    h1 = jnp.maximum(h1, 0.0)
    h2 = jnp.dot(h1.astype(jnp.bfloat16), w2_ref[0],
                 preferred_element_type=jnp.float32) + b2
    x2 = _layer_norm(x1 + h2, g2, be2)

    act_ref[...] = x2.reshape(Bt, S_pad, E)

    # Final LayerNorm on the CLS rows, fused into the last layer iteration.
    @pl.when(layer == num_layers - 1)
    def _():
        cls = x2.reshape(Bt, S_pad, E)[:, 0:1, :]        # (Bt, 1, E)
        o_ref[...] = _layer_norm(cls, gn, bn)


# ---------------------------- parameters ----------------------------

def init_params(key, img_size, patch_size, in_channels, embed_dim,
                num_heads, num_layers):
    H, W = img_size
    num_patches = (H // patch_size) * (W // patch_size)
    std = 0.02
    keys = jax.random.split(key, 4 + num_layers)
    E = embed_dim
    params = {
        "conv_w": std * jax.random.normal(
            keys[0], (E, in_channels, patch_size, patch_size), jnp.float32),
        "conv_b": std * jax.random.normal(keys[1], (E,), jnp.float32),
        "cls_token": std * jax.random.normal(keys[2], (1, 1, E), jnp.float32),
        "pos_embed": std * jax.random.normal(
            keys[3], (1, num_patches + 1, E), jnp.float32),
        "layers": [],
        "gn": jnp.ones((E,), jnp.float32),
        "bn": jnp.zeros((E,), jnp.float32),
    }
    for l in range(num_layers):
        lk = jax.random.split(keys[4 + l], 8)
        params["layers"].append({
            "wqkv": std * jax.random.normal(lk[0], (3 * E, E), jnp.float32),
            "bqkv": std * jax.random.normal(lk[1], (3 * E,), jnp.float32),
            "wo": std * jax.random.normal(lk[2], (E, E), jnp.float32),
            "bo": std * jax.random.normal(lk[3], (E,), jnp.float32),
            "w1": std * jax.random.normal(lk[4], (4 * E, E), jnp.float32),
            "b1": std * jax.random.normal(lk[5], (4 * E,), jnp.float32),
            "w2": std * jax.random.normal(lk[6], (E, 4 * E), jnp.float32),
            "b2": std * jax.random.normal(lk[7], (E,), jnp.float32),
            "g1": jnp.ones((E,), jnp.float32), "be1": jnp.zeros((E,), jnp.float32),
            "g2": jnp.ones((E,), jnp.float32), "be2": jnp.zeros((E,), jnp.float32),
        })
    return params


def prepare_params(params, *, num_heads):
    """One-time weight prep: transpose, fuse QKV, fold scale, pack vectors."""
    E, C, P, _ = params["conv_w"].shape
    H = num_heads
    dh = E // H
    scale = 1.0 / math.sqrt(dh)
    bf = jnp.bfloat16

    def pad4(v):
        return jnp.pad(v, (0, 4 * E - v.shape[0]))

    wqkv_l, wo_l, w1_l, w2_l, vec_l = [], [], [], [], []
    for lyr in params["layers"]:
        wqkv = lyr["wqkv"]                       # (3E, E): rows = [Wq; Wk; Wv]
        bqkv = lyr["bqkv"]                       # (3E,)
        # Fold the 1/sqrt(dh) attention scale into the Q projection + bias.
        wqkv_s = jnp.concatenate([wqkv[0:E] * scale, wqkv[E:3 * E]], axis=0)
        bqkv_s = jnp.concatenate([bqkv[0:E] * scale, bqkv[E:3 * E]], axis=0)
        wqkv_l.append(wqkv_s.T)                  # (E, 3E)
        wo_l.append(lyr["wo"].T)                 # (E, E)
        w1_l.append(lyr["w1"].T)                 # (E, 4E)
        w2_l.append(lyr["w2"].T)                 # (4E, E)
        vec_l.append(jnp.stack([
            pad4(bqkv_s), pad4(lyr["bo"]), pad4(lyr["b1"]), pad4(lyr["b2"]),
            pad4(lyr["g1"]), pad4(lyr["be1"]), pad4(lyr["g2"]), pad4(lyr["be2"]),
            pad4(params["gn"]), pad4(params["bn"])], axis=0))   # (10, 4E)

    prep = {
        "wqkv": jnp.stack(wqkv_l).astype(bf),    # (L, E, 3E)
        "wo": jnp.stack(wo_l).astype(bf),        # (L, E, E)
        "w1": jnp.stack(w1_l).astype(bf),        # (L, E, 4E)
        "w2": jnp.stack(w2_l).astype(bf),        # (L, 4E, E)
        "vecs": jnp.stack(vec_l).astype(jnp.float32),   # (L, 10, 4E)
        "conv_w": params["conv_w"].reshape(E, C * P * P).T.astype(bf),
        "conv_b": params["conv_b"].reshape(1, E),
        "cls_token": params["cls_token"],
        "pos_embed": params["pos_embed"],
    }
    return prep


# ---------------------------- forward ----------------------------

def vit_encoder_forward(x, prep, *, patch_size, num_heads):
    B, C, Himg, Wimg = x.shape
    P = patch_size
    nh, nw = Himg // P, Wimg // P
    N = nh * nw
    E = prep["conv_b"].shape[1]
    S = N + 1
    vmem_limit = _vmem_limit_bytes()

    # Patch extraction (glue): (B,C,H,W) -> (B*N, C*P*P), columns in (C,P,P) order.
    patches = (x.reshape(B, C, nh, P, nw, P)
                 .transpose(0, 2, 4, 1, 3, 5)
                 .reshape(B * N, C * P * P)).astype(jnp.bfloat16)
    BN = B * N
    K = C * P * P
    if BN >= 512:
        tm = 512
    elif BN >= 256:
        tm = 256
    else:
        tm = _round_up(BN, 8)
    BN_pad = _round_up(BN, tm)
    if BN_pad != BN:
        patches = jnp.pad(patches, ((0, BN_pad - BN), (0, 0)))

    embed = pl.pallas_call(
        patch_embed_kernel,
        out_shape=jax.ShapeDtypeStruct((BN_pad, E), jnp.float32),
        grid=(BN_pad // tm,),
        in_specs=[pl.BlockSpec((tm, K), lambda i: (i, 0)),
                  pl.BlockSpec((K, E), lambda i: (0, 0)),
                  pl.BlockSpec((1, E), lambda i: (0, 0))],
        out_specs=pl.BlockSpec((tm, E), lambda i: (i, 0)),
        compiler_params=pltpu.CompilerParams(
            dimension_semantics=("parallel",),
            vmem_limit_bytes=vmem_limit),
    )(patches, prep["conv_w"], prep["conv_b"])
    embed = embed[:BN].reshape(B, N, E)

    # cls token + positional embedding (glue); pad S to sublane granularity
    # only (padded keys are masked inside the kernel) and pad B to the tile.
    seq = jnp.concatenate(
        [jnp.broadcast_to(prep["cls_token"], (B, 1, E)), embed], axis=1)
    seq = seq + prep["pos_embed"]                                   # (B, S, E)
    S_pad = _round_up(S, 16)
    Bt = _pick_batch_tile(B, S_pad, E, num_heads)
    B_pad = _round_up(B, Bt)
    seq = jnp.pad(seq, ((0, B_pad - B), (0, S_pad - S), (0, 0)))

    L = prep["wqkv"].shape[0]
    weights = (prep["wqkv"], prep["wo"], prep["w1"], prep["w2"], prep["vecs"])
    in_specs = [pl.BlockSpec((Bt, S_pad, E), lambda b, l: (b, 0, 0))]
    in_specs += [pl.BlockSpec((1,) + w.shape[1:], lambda b, l: (l, 0, 0))
                 for w in weights]

    cls_out = pl.pallas_call(
        functools.partial(fused_encoder_kernel, num_heads=num_heads, seq_len=S),
        out_shape=jax.ShapeDtypeStruct((B_pad, 1, E), jnp.float32),
        grid=(B_pad // Bt, L),          # batch tiles parallel, layers serial
        in_specs=in_specs,
        out_specs=pl.BlockSpec((Bt, 1, E), lambda b, l: (b, 0, 0)),
        scratch_shapes=[pltpu.VMEM((Bt, S_pad, E), jnp.float32)],
        compiler_params=pltpu.CompilerParams(
            dimension_semantics=("parallel", "arbitrary"),
            vmem_limit_bytes=vmem_limit),
    )(seq, *weights)

    return cls_out[:B, 0, :]                                        # (B, E)


if __name__ == "__main__":
    img_size = (16, 16)
    patch_size = 4
    in_channels = 4
    embed_dim = 32
    num_heads = 4
    num_layers = 2
    batch = 2

    key = jax.random.PRNGKey(0)
    kx, kp = jax.random.split(key)
    x = jax.random.normal(kx, (batch, in_channels, *img_size), jnp.float32)
    params = init_params(kp, img_size, patch_size, in_channels, embed_dim,
                         num_heads, num_layers)
    prep = prepare_params(params, num_heads=num_heads)

    fwd = jax.jit(functools.partial(vit_encoder_forward,
                                    patch_size=patch_size, num_heads=num_heads))
    out = fwd(x, prep)
    out = jax.block_until_ready(out)
    assert out.shape == (batch, embed_dim)
    assert bool(jnp.all(jnp.isfinite(out)))
    print("KERNEL_OK")
</pallas_src>

<mosaic_0001>
module attributes {stable_mosaic.version = 11 : i64} {
  func.func @patch_embed_kernel(%arg0: i32, %arg1: memref<32x64xbf16, #tpu.memory_space<vmem>>, %arg2: memref<64x32xbf16, #tpu.memory_space<vmem>>, %arg3: memref<1x32xf32, #tpu.memory_space<vmem>>, %arg4: memref<32x32xf32, #tpu.memory_space<vmem>>) attributes {dimension_semantics = [#tpu.dimension_semantics<parallel>], iteration_bounds = array<i64: 1>, scalar_prefetch = 0 : i64, scratch_operands = 0 : i64, tpu.core_type = #tpu.core_type<tc>, window_params = [{transform_indices = @transform_0, window_bounds = array<i64: 32, 64>}, {pipeline_mode = #tpu.pipeline_mode<synchronous>, transform_indices = @transform_1, window_bounds = array<i64: 64, 32>}, {pipeline_mode = #tpu.pipeline_mode<synchronous>, transform_indices = @transform_2, window_bounds = array<i64: 1, 32>}, {transform_indices = @transform_3, window_bounds = array<i64: 32, 32>}]} {
    %c0 = arith.constant 0 : index
    %c0_0 = arith.constant 0 : index
    %0 = vector.load %arg1[%c0, %c0_0] : memref<32x64xbf16, #tpu.memory_space<vmem>>, vector<32x64xbf16>
    %c0_1 = arith.constant 0 : index
    %c0_2 = arith.constant 0 : index
    %1 = vector.load %arg2[%c0_1, %c0_2] : memref<64x32xbf16, #tpu.memory_space<vmem>>, vector<64x32xbf16>
    %cst = arith.constant dense<0.000000e+00> : vector<32x32xf32>
    %2 = tpu.matmul %0, %1, %cst {dimension_numbers = #tpu.dot_dimension_numbers<[1], [0], [0], [1], [0, 0, 1, 1], [], []>} : vector<32x64xbf16>, vector<64x32xbf16>, vector<32x32xf32> -> vector<32x32xf32>
    %c0_3 = arith.constant 0 : index
    %c0_4 = arith.constant 0 : index
    %3 = vector.load %arg3[%c0_3, %c0_4] : memref<1x32xf32, #tpu.memory_space<vmem>>, vector<1x32xf32>
    %4 = vector.broadcast %3 : vector<1x32xf32> to vector<32x32xf32>
    %5 = arith.addf %2, %4 : vector<32x32xf32>
    %c0_5 = arith.constant 0 : index
    %c0_6 = arith.constant 0 : index
    %6 = vector.load %arg4[%c0_5, %c0_6] : memref<32x32xf32, #tpu.memory_space<vmem>>, vector<32x32xf32>
    tpu.vector_store %arg4[%c0_5, %c0_6], %5 {strides = array<i32>} : memref<32x32xf32, #tpu.memory_space<vmem>>, vector<32x32xf32>,
    return
  }
  func.func @transform_0(%arg0: i32) -> (i32, i32) {
    %c0_i32 = arith.constant 0 : i32
    %c0_i32_0 = arith.constant 0 : i32
    return %arg0, %c0_i32 : i32, i32
  }
  func.func @transform_1(%arg0: i32) -> (i32, i32) {
    %c0_i32 = arith.constant 0 : i32
    %c0_i32_0 = arith.constant 0 : i32
    %c0_i32_1 = arith.constant 0 : i32
    return %c0_i32, %c0_i32_0 : i32, i32
  }
  func.func @transform_2(%arg0: i32) -> (i32, i32) {
    %c0_i32 = arith.constant 0 : i32
    %c0_i32_0 = arith.constant 0 : i32
    %c0_i32_1 = arith.constant 0 : i32
    return %c0_i32, %c0_i32_0 : i32, i32
  }
  func.func @transform_3(%arg0: i32) -> (i32, i32) {
    %c0_i32 = arith.constant 0 : i32
    %c0_i32_0 = arith.constant 0 : i32
    return %arg0, %c0_i32 : i32, i32
  }
}

module attributes {stable_mosaic.version = 11 : i64} {
  func.func @fused_encoder_kernel(%arg0: i32, %arg1: i32, %arg2: memref<2x32x32xf32, #tpu.memory_space<vmem>>, %arg3: memref<1x32x96xbf16, #tpu.memory_space<vmem>>, %arg4: memref<1x32x32xbf16, #tpu.memory_space<vmem>>, %arg5: memref<1x32x128xbf16, #tpu.memory_space<vmem>>, %arg6: memref<1x128x32xbf16, #tpu.memory_space<vmem>>, %arg7: memref<1x10x128xf32, #tpu.memory_space<vmem>>, %arg8: memref<2x1x32xf32, #tpu.memory_space<vmem>>, %arg9: memref<2x32x32xf32, #tpu.memory_space<vmem>>) attributes {dimension_semantics = [#tpu.dimension_semantics<parallel>, #tpu.dimension_semantics<arbitrary>], iteration_bounds = array<i64: 1, 2>, scalar_prefetch = 0 : i64, scratch_operands = 1 : i64, tpu.core_type = #tpu.core_type<tc>, window_params = [{transform_indices = @transform_0, window_bounds = array<i64: 2, 32, 32>}, {transform_indices = @transform_1, window_bounds = array<i64: 1, 32, 96>}, {transform_indices = @transform_2, window_bounds = array<i64: 1, 32, 32>}, {transform_indices = @transform_3, window_bounds = array<i64: 1, 32, 128>}, {transform_indices = @transform_4, window_bounds = array<i64: 1, 128, 32>}, {transform_indices = @transform_5, window_bounds = array<i64: 1, 10, 128>}, {transform_indices = @transform_6, window_bounds = array<i64: 2, 1, 32>}]} {
    %c0_i32 = arith.constant 0 : i32
    %0 = arith.cmpi eq, %arg1, %c0_i32 : i32
    %1 = arith.extui %0 : i1 to i32
    %c0_i32_0 = arith.constant 0 : i32
    %2 = arith.cmpi ne, %1, %c0_i32_0 : i32
    scf.if %2 {
      %c0_41 = arith.constant 0 : index
      %c0_42 = arith.constant 0 : index
      %c0_43 = arith.constant 0 : index
      %158 = vector.load %arg2[%c0_41, %c0_42, %c0_43] : memref<2x32x32xf32, #tpu.memory_space<vmem>>, vector<2x32x32xf32>
      %c0_44 = arith.constant 0 : index
      %c0_45 = arith.constant 0 : index
      %c0_46 = arith.constant 0 : index
      %159 = vector.load %arg9[%c0_44, %c0_45, %c0_46] : memref<2x32x32xf32, #tpu.memory_space<vmem>>, vector<2x32x32xf32>
      tpu.vector_store %arg9[%c0_44, %c0_45, %c0_46], %158 {strides = array<i32>} : memref<2x32x32xf32, #tpu.memory_space<vmem>>, vector<2x32x32xf32>,
    } else {
    }
    %c0 = arith.constant 0 : index
    %c0_1 = arith.constant 0 : index
    %c0_2 = arith.constant 0 : index
    %3 = vector.load %arg9[%c0, %c0_1, %c0_2] : memref<2x32x32xf32, #tpu.memory_space<vmem>>, vector<2x32x32xf32>
    %4 = vector.shape_cast %3 : vector<2x32x32xf32> to vector<64x32xf32>
    %5 = arith.truncf %4 : vector<64x32xf32> to vector<64x32xbf16>
    %c0_3 = arith.constant 0 : index
    %c0_4 = arith.constant 0 : index
    %c0_5 = arith.constant 0 : index
    %6 = vector.load %arg7[%c0_3, %c0_4, %c0_5] : memref<1x10x128xf32, #tpu.memory_space<vmem>>, vector<1x10x128xf32>
    %7 = vector.shape_cast %6 : vector<1x10x128xf32> to vector<10x128xf32>
    %8 = vector.extract_strided_slice %7 {offsets = [0, 0], sizes = [1, 96], strides = [1, 1]} : vector<10x128xf32> to vector<1x96xf32>
    %9 = vector.extract_strided_slice %7 {offsets = [1, 0], sizes = [1, 32], strides = [1, 1]} : vector<10x128xf32> to vector<1x32xf32>
    %10 = vector.extract_strided_slice %7 {offsets = [2, 0], sizes = [1, 128], strides = [1, 1]} : vector<10x128xf32> to vector<1x128xf32>
    %11 = vector.extract_strided_slice %7 {offsets = [3, 0], sizes = [1, 32], strides = [1, 1]} : vector<10x128xf32> to vector<1x32xf32>
    %12 = vector.extract_strided_slice %7 {offsets = [4, 0], sizes = [1, 32], strides = [1, 1]} : vector<10x128xf32> to vector<1x32xf32>
    %13 = vector.extract_strided_slice %7 {offsets = [5, 0], sizes = [1, 32], strides = [1, 1]} : vector<10x128xf32> to vector<1x32xf32>
    %14 = vector.extract_strided_slice %7 {offsets = [6, 0], sizes = [1, 32], strides = [1, 1]} : vector<10x128xf32> to vector<1x32xf32>
    %15 = vector.extract_strided_slice %7 {offsets = [7, 0], sizes = [1, 32], strides = [1, 1]} : vector<10x128xf32> to vector<1x32xf32>
    %16 = vector.extract_strided_slice %7 {offsets = [8, 0], sizes = [1, 32], strides = [1, 1]} : vector<10x128xf32> to vector<1x32xf32>
    %17 = vector.extract_strided_slice %7 {offsets = [9, 0], sizes = [1, 32], strides = [1, 1]} : vector<10x128xf32> to vector<1x32xf32>
    %c0_6 = arith.constant 0 : index
    %c0_7 = arith.constant 0 : index
    %c0_8 = arith.constant 0 : index
    %18 = vector.load %arg3[%c0_6, %c0_7, %c0_8] : memref<1x32x96xbf16, #tpu.memory_space<vmem>>, vector<1x32x96xbf16>
    %19 = vector.shape_cast %18 : vector<1x32x96xbf16> to vector<32x96xbf16>
    %cst = arith.constant dense<0.000000e+00> : vector<64x96xf32>
    %20 = tpu.matmul %5, %19, %cst {dimension_numbers = #tpu.dot_dimension_numbers<[1], [0], [0], [1], [0, 0, 1, 1], [], []>} : vector<64x32xbf16>, vector<32x96xbf16>, vector<64x96xf32> -> vector<64x96xf32>
    %21 = vector.broadcast %8 : vector<1x96xf32> to vector<64x96xf32>
    %22 = arith.addf %20, %21 : vector<64x96xf32>
    %23 = vector.extract_strided_slice %22 {offsets = [0, 0], sizes = [64, 8], strides = [1, 1]} : vector<64x96xf32> to vector<64x8xf32>
    %24 = vector.shape_cast %23 : vector<64x8xf32> to vector<2x1x32x8xf32>
    %25 = vector.extract_strided_slice %22 {offsets = [0, 8], sizes = [64, 8], strides = [1, 1]} : vector<64x96xf32> to vector<64x8xf32>
    %26 = vector.shape_cast %25 : vector<64x8xf32> to vector<2x1x32x8xf32>
    %27 = vector.extract_strided_slice %22 {offsets = [0, 16], sizes = [64, 8], strides = [1, 1]} : vector<64x96xf32> to vector<64x8xf32>
    %28 = vector.shape_cast %27 : vector<64x8xf32> to vector<2x1x32x8xf32>
    %29 = vector.extract_strided_slice %22 {offsets = [0, 24], sizes = [64, 8], strides = [1, 1]} : vector<64x96xf32> to vector<64x8xf32>
    %30 = vector.shape_cast %29 : vector<64x8xf32> to vector<2x1x32x8xf32>
    %31 = tpu.concatenate %24, %26, %28, %30 in 1 : vector<2x1x32x8xf32>, vector<2x1x32x8xf32>, vector<2x1x32x8xf32>, vector<2x1x32x8xf32> -> vector<2x4x32x8xf32>
    %32 = vector.shape_cast %31 : vector<2x4x32x8xf32> to vector<8x32x8xf32>
    %33 = arith.truncf %32 : vector<8x32x8xf32> to vector<8x32x8xbf16>
    %34 = vector.extract_strided_slice %22 {offsets = [0, 32], sizes = [64, 8], strides = [1, 1]} : vector<64x96xf32> to vector<64x8xf32>
    %35 = vector.shape_cast %34 : vector<64x8xf32> to vector<2x1x32x8xf32>
    %36 = vector.extract_strided_slice %22 {offsets = [0, 40], sizes = [64, 8], strides = [1, 1]} : vector<64x96xf32> to vector<64x8xf32>
    %37 = vector.shape_cast %36 : vector<64x8xf32> to vector<2x1x32x8xf32>
    %38 = vector.extract_strided_slice %22 {offsets = [0, 48], sizes = [64, 8], strides = [1, 1]} : vector<64x96xf32> to vector<64x8xf32>
    %39 = vector.shape_cast %38 : vector<64x8xf32> to vector<2x1x32x8xf32>
    %40 = vector.extract_strided_slice %22 {offsets = [0, 56], sizes = [64, 8], strides = [1, 1]} : vector<64x96xf32> to vector<64x8xf32>
    %41 = vector.shape_cast %40 : vector<64x8xf32> to vector<2x1x32x8xf32>
    %42 = tpu.concatenate %35, %37, %39, %41 in 1 : vector<2x1x32x8xf32>, vector<2x1x32x8xf32>, vector<2x1x32x8xf32>, vector<2x1x32x8xf32> -> vector<2x4x32x8xf32>
    %43 = vector.shape_cast %42 : vector<2x4x32x8xf32> to vector<8x32x8xf32>
    %44 = arith.truncf %43 : vector<8x32x8xf32> to vector<8x32x8xbf16>
    %45 = vector.extract_strided_slice %22 {offsets = [0, 64], sizes = [64, 8], strides = [1, 1]} : vector<64x96xf32> to vector<64x8xf32>
    %46 = vector.shape_cast %45 : vector<64x8xf32> to vector<2x1x32x8xf32>
    %47 = vector.extract_strided_slice %22 {offsets = [0, 72], sizes = [64, 8], strides = [1, 1]} : vector<64x96xf32> to vector<64x8xf32>
    %48 = vector.shape_cast %47 : vector<64x8xf32> to vector<2x1x32x8xf32>
    %49 = vector.extract_strided_slice %22 {offsets = [0, 80], sizes = [64, 8], strides = [1, 1]} : vector<64x96xf32> to vector<64x8xf32>
    %50 = vector.shape_cast %49 : vector<64x8xf32> to vector<2x1x32x8xf32>
    %51 = vector.extract_strided_slice %22 {offsets = [0, 88], sizes = [64, 8], strides = [1, 1]} : vector<64x96xf32> to vector<64x8xf32>
    %52 = vector.shape_cast %51 : vector<64x8xf32> to vector<2x1x32x8xf32>
    %53 = tpu.concatenate %46, %48, %50, %52 in 1 : vector<2x1x32x8xf32>, vector<2x1x32x8xf32>, vector<2x1x32x8xf32>, vector<2x1x32x8xf32> -> vector<2x4x32x8xf32>
    %54 = vector.shape_cast %53 : vector<2x4x32x8xf32> to vector<8x32x8xf32>
    %55 = arith.truncf %54 : vector<8x32x8xf32> to vector<8x32x8xbf16>
    "tpu.trace_start"() <{level = 10 : i32, message = "bqd,bkd->bqk"}> : () -> ()
    %cst_9 = arith.constant dense<0.000000e+00> : vector<8x32x32xf32>
    %56 = tpu.matmul %33, %44, %cst_9 {dimension_numbers = #tpu.dot_dimension_numbers<[2], [2], [1], [1], [0, 0, 0, 1, 1, 1], [0], [0]>} : vector<8x32x8xbf16>, vector<8x32x8xbf16>, vector<8x32x32xf32> -> vector<8x32x32xf32>
    "tpu.trace_stop"() : () -> ()
    %57 = tpu.iota {dimensions = array<i32: 2>} : vector<1x1x32xi32>
    %c17_i32 = arith.constant 17 : i32
    %58 = vector.broadcast %c17_i32 : i32 to vector<1x1x32xi32>
    %59 = arith.cmpi slt, %57, %58 : vector<1x1x32xi32>
    %cst_10 = arith.constant -1.000000e+30 : f32
    %60 = vector.shape_cast %59 : vector<1x1x32xi1> to vector<1x1x32xi1>
    %61 = vector.broadcast %60 : vector<1x1x32xi1> to vector<8x32x32xi1>
    %62 = vector.broadcast %cst_10 : f32 to vector<8x32x32xf32>
    %63 = arith.select %61, %56, %62 : vector<8x32x32xi1>, vector<8x32x32xf32>
    %cst_11 = arith.constant dense<0xFF800000> : vector<8x32xf32>
    %64 = vector.multi_reduction <maximumf>, %63, %cst_11 [2] : vector<8x32x32xf32> to vector<8x32xf32>
    %65 = vector.shape_cast %64 : vector<8x32xf32> to vector<8x32x1xf32>
    %66 = vector.broadcast %65 : vector<8x32x1xf32> to vector<8x32x32xf32>
    %67 = arith.subf %63, %66 : vector<8x32x32xf32>
    %68 = math.exp %67 : vector<8x32x32xf32>
    %cst_12 = arith.constant dense<0.000000e+00> : vector<8x32xf32>
    %69 = vector.multi_reduction <add>, %68, %cst_12 [2] : vector<8x32x32xf32> to vector<8x32xf32>
    %70 = vector.shape_cast %69 : vector<8x32xf32> to vector<8x32x1xf32>
    %71 = tpu.reciprocal %70 {approx = true} : vector<8x32x1xf32> -> vector<8x32x1xf32>
    %72 = vector.broadcast %71 : vector<8x32x1xf32> to vector<8x32x32xf32>
    %73 = arith.mulf %68, %72 : vector<8x32x32xf32>
    %74 = arith.truncf %73 : vector<8x32x32xf32> to vector<8x32x32xbf16>
    "tpu.trace_start"() <{level = 10 : i32, message = "bqk,bkd->bqd"}> : () -> ()
    %cst_13 = arith.constant dense<0.000000e+00> : vector<8x32x8xf32>
    %75 = tpu.matmul %74, %55, %cst_13 {dimension_numbers = #tpu.dot_dimension_numbers<[2], [1], [1], [2], [0, 0, 0, 1, 1, 2], [0], [0]>} : vector<8x32x32xbf16>, vector<8x32x8xbf16>, vector<8x32x8xf32> -> vector<8x32x8xf32>
    "tpu.trace_stop"() : () -> ()
    %76 = vector.shape_cast %75 : vector<8x32x8xf32> to vector<2x4x32x8xf32>
    %77 = vector.extract_strided_slice %76 {offsets = [0, 0, 0, 0], sizes = [2, 1, 32, 8], strides = [1, 1, 1, 1]} : vector<2x4x32x8xf32> to vector<2x1x32x8xf32>
    %78 = vector.shape_cast %77 : vector<2x1x32x8xf32> to vector<2x32x8xf32>
    %79 = vector.extract_strided_slice %76 {offsets = [0, 1, 0, 0], sizes = [2, 1, 32, 8], strides = [1, 1, 1, 1]} : vector<2x4x32x8xf32> to vector<2x1x32x8xf32>
    %80 = vector.shape_cast %79 : vector<2x1x32x8xf32> to vector<2x32x8xf32>
    %81 = vector.extract_strided_slice %76 {offsets = [0, 2, 0, 0], sizes = [2, 1, 32, 8], strides = [1, 1, 1, 1]} : vector<2x4x32x8xf32> to vector<2x1x32x8xf32>
    %82 = vector.shape_cast %81 : vector<2x1x32x8xf32> to vector<2x32x8xf32>
    %83 = vector.extract_strided_slice %76 {offsets = [0, 3, 0, 0], sizes = [2, 1, 32, 8], strides = [1, 1, 1, 1]} : vector<2x4x32x8xf32> to vector<2x1x32x8xf32>
    %84 = vector.shape_cast %83 : vector<2x1x32x8xf32> to vector<2x32x8xf32>
    %85 = tpu.concatenate %78, %80, %82, %84 in 2 : vector<2x32x8xf32>, vector<2x32x8xf32>, vector<2x32x8xf32>, vector<2x32x8xf32> -> vector<2x32x32xf32>
    %86 = vector.shape_cast %85 : vector<2x32x32xf32> to vector<64x32xf32>
    %87 = arith.truncf %86 : vector<64x32xf32> to vector<64x32xbf16>
    %c0_14 = arith.constant 0 : index
    %c0_15 = arith.constant 0 : index
    %c0_16 = arith.constant 0 : index
    %88 = vector.load %arg4[%c0_14, %c0_15, %c0_16] : memref<1x32x32xbf16, #tpu.memory_space<vmem>>, vector<1x32x32xbf16>
    %89 = vector.shape_cast %88 : vector<1x32x32xbf16> to vector<32x32xbf16>
    %cst_17 = arith.constant dense<0.000000e+00> : vector<64x32xf32>
    %90 = tpu.matmul %87, %89, %cst_17 {dimension_numbers = #tpu.dot_dimension_numbers<[1], [0], [0], [1], [0, 0, 1, 1], [], []>} : vector<64x32xbf16>, vector<32x32xbf16>, vector<64x32xf32> -> vector<64x32xf32>
    %91 = vector.broadcast %9 : vector<1x32xf32> to vector<64x32xf32>
    %92 = arith.addf %90, %91 : vector<64x32xf32>
    %93 = arith.addf %4, %92 : vector<64x32xf32>
    %cst_18 = arith.constant dense<0.000000e+00> : vector<64xf32>
    %94 = vector.multi_reduction <add>, %93, %cst_18 [1] : vector<64x32xf32> to vector<64xf32>
    %95 = vector.shape_cast %94 : vector<64xf32> to vector<64x1xf32>
    %cst_19 = arith.constant 3.200000e+01 : f32
    %96 = vector.broadcast %cst_19 : f32 to vector<64x1xf32>
    %97 = arith.divf %95, %96 : vector<64x1xf32>
    %98 = vector.broadcast %97 : vector<64x1xf32> to vector<64x32xf32>
    %99 = arith.subf %93, %98 : vector<64x32xf32>
    %100 = arith.mulf %99, %99 : vector<64x32xf32>
    %cst_20 = arith.constant dense<0.000000e+00> : vector<64xf32>
    %101 = vector.multi_reduction <add>, %100, %cst_20 [1] : vector<64x32xf32> to vector<64xf32>
    %102 = vector.shape_cast %101 : vector<64xf32> to vector<64x1xf32>
    %cst_21 = arith.constant 3.200000e+01 : f32
    %103 = vector.broadcast %cst_21 : f32 to vector<64x1xf32>
    %104 = arith.divf %102, %103 : vector<64x1xf32>
    %105 = vector.broadcast %97 : vector<64x1xf32> to vector<64x32xf32>
    %106 = arith.subf %93, %105 : vector<64x32xf32>
    %cst_22 = arith.constant 9.99999974E-6 : f32
    %107 = vector.broadcast %cst_22 : f32 to vector<64x1xf32>
    %108 = arith.addf %104, %107 : vector<64x1xf32>
    %109 = math.rsqrt %108 : vector<64x1xf32>
    %110 = vector.broadcast %109 : vector<64x1xf32> to vector<64x32xf32>
    %111 = arith.mulf %106, %110 : vector<64x32xf32>
    %112 = vector.broadcast %12 : vector<1x32xf32> to vector<64x32xf32>
    %113 = arith.mulf %111, %112 : vector<64x32xf32>
    %114 = vector.broadcast %13 : vector<1x32xf32> to vector<64x32xf32>
    %115 = arith.addf %113, %114 : vector<64x32xf32>
    %116 = arith.truncf %115 : vector<64x32xf32> to vector<64x32xbf16>
    %c0_23 = arith.constant 0 : index
    %c0_24 = arith.constant 0 : index
    %c0_25 = arith.constant 0 : index
    %117 = vector.load %arg5[%c0_23, %c0_24, %c0_25] : memref<1x32x128xbf16, #tpu.memory_space<vmem>>, vector<1x32x128xbf16>
    %118 = vector.shape_cast %117 : vector<1x32x128xbf16> to vector<32x128xbf16>
    %cst_26 = arith.constant dense<0.000000e+00> : vector<64x128xf32>
    %119 = tpu.matmul %116, %118, %cst_26 {dimension_numbers = #tpu.dot_dimension_numbers<[1], [0], [0], [1], [0, 0, 1, 1], [], []>} : vector<64x32xbf16>, vector<32x128xbf16>, vector<64x128xf32> -> vector<64x128xf32>
    %120 = vector.broadcast %10 : vector<1x128xf32> to vector<64x128xf32>
    %121 = arith.addf %119, %120 : vector<64x128xf32>
    %cst_27 = arith.constant 0.000000e+00 : f32
    %122 = vector.broadcast %cst_27 : f32 to vector<64x128xf32>
    %123 = arith.maximumf %121, %122 : vector<64x128xf32>
    %124 = arith.truncf %123 : vector<64x128xf32> to vector<64x128xbf16>
    %c0_28 = arith.constant 0 : index
    %c0_29 = arith.constant 0 : index
    %c0_30 = arith.constant 0 : index
    %125 = vector.load %arg6[%c0_28, %c0_29, %c0_30] : memref<1x128x32xbf16, #tpu.memory_space<vmem>>, vector<1x128x32xbf16>
    %126 = vector.shape_cast %125 : vector<1x128x32xbf16> to vector<128x32xbf16>
    %cst_31 = arith.constant dense<0.000000e+00> : vector<64x32xf32>
    %127 = tpu.matmul %124, %126, %cst_31 {dimension_numbers = #tpu.dot_dimension_numbers<[1], [0], [0], [1], [0, 0, 1, 1], [], []>} : vector<64x128xbf16>, vector<128x32xbf16>, vector<64x32xf32> -> vector<64x32xf32>
    %128 = vector.broadcast %11 : vector<1x32xf32> to vector<64x32xf32>
    %129 = arith.addf %127, %128 : vector<64x32xf32>
    %130 = arith.addf %115, %129 : vector<64x32xf32>
    %cst_32 = arith.constant dense<0.000000e+00> : vector<64xf32>
    %131 = vector.multi_reduction <add>, %130, %cst_32 [1] : vector<64x32xf32> to vector<64xf32>
    %132 = vector.shape_cast %131 : vector<64xf32> to vector<64x1xf32>
    %cst_33 = arith.constant 3.200000e+01 : f32
    %133 = vector.broadcast %cst_33 : f32 to vector<64x1xf32>
    %134 = arith.divf %132, %133 : vector<64x1xf32>
    %135 = vector.broadcast %134 : vector<64x1xf32> to vector<64x32xf32>
    %136 = arith.subf %130, %135 : vector<64x32xf32>
    %137 = arith.mulf %136, %136 : vector<64x32xf32>
    %cst_34 = arith.constant dense<0.000000e+00> : vector<64xf32>
    %138 = vector.multi_reduction <add>, %137, %cst_34 [1] : vector<64x32xf32> to vector<64xf32>
    %139 = vector.shape_cast %138 : vector<64xf32> to vector<64x1xf32>
    %cst_35 = arith.constant 3.200000e+01 : f32
    %140 = vector.broadcast %cst_35 : f32 to vector<64x1xf32>
    %141 = arith.divf %139, %140 : vector<64x1xf32>
    %142 = vector.broadcast %134 : vector<64x1xf32> to vector<64x32xf32>
    %143 = arith.subf %130, %142 : vector<64x32xf32>
    %cst_36 = arith.constant 9.99999974E-6 : f32
    %144 = vector.broadcast %cst_36 : f32 to vector<64x1xf32>
    %145 = arith.addf %141, %144 : vector<64x1xf32>
    %146 = math.rsqrt %145 : vector<64x1xf32>
    %147 = vector.broadcast %146 : vector<64x1xf32> to vector<64x32xf32>
    %148 = arith.mulf %143, %147 : vector<64x32xf32>
    %149 = vector.broadcast %14 : vector<1x32xf32> to vector<64x32xf32>
    %150 = arith.mulf %148, %149 : vector<64x32xf32>
    %151 = vector.broadcast %15 : vector<1x32xf32> to vector<64x32xf32>
    %152 = arith.addf %150, %151 : vector<64x32xf32>
    %153 = vector.shape_cast %152 : vector<64x32xf32> to vector<2x32x32xf32>
    %c0_37 = arith.constant 0 : index
    %c0_38 = arith.constant 0 : index
    %c0_39 = arith.constant 0 : index
    %154 = vector.load %arg9[%c0_37, %c0_38, %c0_39] : memref<2x32x32xf32, #tpu.memory_space<vmem>>, vector<2x32x32xf32>
    tpu.vector_store %arg9[%c0_37, %c0_38, %c0_39], %153 {strides = array<i32>} : memref<2x32x32xf32, #tpu.memory_space<vmem>>, vector<2x32x32xf32>,
    %c1_i32 = arith.constant 1 : i32
    %155 = arith.cmpi eq, %arg1, %c1_i32 : i32
    %156 = arith.extui %155 : i1 to i32
    %c0_i32_40 = arith.constant 0 : i32
    %157 = arith.cmpi ne, %156, %c0_i32_40 : i32
    scf.if %157 {
      %158 = vector.shape_cast %152 : vector<64x32xf32> to vector<2x32x32xf32>
      %159 = vector.extract_strided_slice %158 {offsets = [0, 0, 0], sizes = [2, 1, 32], strides = [1, 1, 1]} : vector<2x32x32xf32> to vector<2x1x32xf32>
      %cst_41 = arith.constant dense<0.000000e+00> : vector<2x1xf32>
      %160 = vector.multi_reduction <add>, %159, %cst_41 [2] : vector<2x1x32xf32> to vector<2x1xf32>
      %161 = vector.shape_cast %160 : vector<2x1xf32> to vector<2x1x1xf32>
      %cst_42 = arith.constant 3.200000e+01 : f32
      %162 = vector.broadcast %cst_42 : f32 to vector<2x1x1xf32>
      %163 = arith.divf %161, %162 : vector<2x1x1xf32>
      %164 = vector.broadcast %163 : vector<2x1x1xf32> to vector<2x1x32xf32>
      %165 = arith.subf %159, %164 : vector<2x1x32xf32>
      %166 = arith.mulf %165, %165 : vector<2x1x32xf32>
      %cst_43 = arith.constant dense<0.000000e+00> : vector<2x1xf32>
      %167 = vector.multi_reduction <add>, %166, %cst_43 [2] : vector<2x1x32xf32> to vector<2x1xf32>
      %168 = vector.shape_cast %167 : vector<2x1xf32> to vector<2x1x1xf32>
      %cst_44 = arith.constant 3.200000e+01 : f32
      %169 = vector.broadcast %cst_44 : f32 to vector<2x1x1xf32>
      %170 = arith.divf %168, %169 : vector<2x1x1xf32>
      %171 = vector.broadcast %163 : vector<2x1x1xf32> to vector<2x1x32xf32>
      %172 = arith.subf %159, %171 : vector<2x1x32xf32>
      %cst_45 = arith.constant 9.99999974E-6 : f32
      %173 = vector.broadcast %cst_45 : f32 to vector<2x1x1xf32>
      %174 = arith.addf %170, %173 : vector<2x1x1xf32>
      %175 = math.rsqrt %174 : vector<2x1x1xf32>
      %176 = vector.broadcast %175 : vector<2x1x1xf32> to vector<2x1x32xf32>
      %177 = arith.mulf %172, %176 : vector<2x1x32xf32>
      %178 = vector.shape_cast %16 : vector<1x32xf32> to vector<1x1x32xf32>
      %179 = vector.broadcast %178 : vector<1x1x32xf32> to vector<2x1x32xf32>
      %180 = arith.mulf %177, %179 : vector<2x1x32xf32>
      %181 = vector.shape_cast %17 : vector<1x32xf32> to vector<1x1x32xf32>
      %182 = vector.broadcast %181 : vector<1x1x32xf32> to vector<2x1x32xf32>
      %183 = arith.addf %180, %182 : vector<2x1x32xf32>
      %c0_46 = arith.constant 0 : index
      %c0_47 = arith.constant 0 : index
      %c0_48 = arith.constant 0 : index
      %184 = vector.load %arg8[%c0_46, %c0_47, %c0_48] : memref<2x1x32xf32, #tpu.memory_space<vmem>>, vector<2x1x32xf32>
      tpu.vector_store %arg8[%c0_46, %c0_47, %c0_48], %183 {strides = array<i32>} : memref<2x1x32xf32, #tpu.memory_space<vmem>>, vector<2x1x32xf32>,
    } else {
    }
    return
  }
  func.func @transform_0(%arg0: i32, %arg1: i32) -> (i32, i32, i32) {
    %c0_i32 = arith.constant 0 : i32
    %c0_i32_0 = arith.constant 0 : i32
    %c0_i32_1 = arith.constant 0 : i32
    return %arg0, %c0_i32, %c0_i32_0 : i32, i32, i32
  }
  func.func @transform_1(%arg0: i32, %arg1: i32) -> (i32, i32, i32) {
    %c0_i32 = arith.constant 0 : i32
    %c0_i32_0 = arith.constant 0 : i32
    %c0_i32_1 = arith.constant 0 : i32
    return %arg1, %c0_i32, %c0_i32_0 : i32, i32, i32
  }
  func.func @transform_2(%arg0: i32, %arg1: i32) -> (i32, i32, i32) {
    %c0_i32 = arith.constant 0 : i32
    %c0_i32_0 = arith.constant 0 : i32
    %c0_i32_1 = arith.constant 0 : i32
    return %arg1, %c0_i32, %c0_i32_0 : i32, i32, i32
  }
  func.func @transform_3(%arg0: i32, %arg1: i32) -> (i32, i32, i32) {
    %c0_i32 = arith.constant 0 : i32
    %c0_i32_0 = arith.constant 0 : i32
    %c0_i32_1 = arith.constant 0 : i32
    return %arg1, %c0_i32, %c0_i32_0 : i32, i32, i32
  }
  func.func @transform_4(%arg0: i32, %arg1: i32) -> (i32, i32, i32) {
    %c0_i32 = arith.constant 0 : i32
    %c0_i32_0 = arith.constant 0 : i32
    %c0_i32_1 = arith.constant 0 : i32
    return %arg1, %c0_i32, %c0_i32_0 : i32, i32, i32
  }
  func.func @transform_5(%arg0: i32, %arg1: i32) -> (i32, i32, i32) {
    %c0_i32 = arith.constant 0 : i32
    %c0_i32_0 = arith.constant 0 : i32
    %c0_i32_1 = arith.constant 0 : i32
    return %arg1, %c0_i32, %c0_i32_0 : i32, i32, i32
  }
  func.func @transform_6(%arg0: i32, %arg1: i32) -> (i32, i32, i32) {
    %c0_i32 = arith.constant 0 : i32
    %c0_i32_0 = arith.constant 0 : i32
    %c0_i32_1 = arith.constant 0 : i32
    return %arg0, %c0_i32, %c0_i32_0 : i32, i32, i32
  }
}

</mosaic_0001>

<bundles_post_ra>
// kernel: vit_encoder_forward.2
= control target key start
LH: loop header
LB: loop body
LE: loop exit
PB: predicated region body
PF: predicated region fallthrough
CT: control target
= control target key end

     0   :  { %vm68_vm0 = vcmask 523264   ;;  %vm124_vm1 = vcmask 261120   ;;  %s219_s1 = inlined_call_operand.vmem [shape: bf16[64,32], index: 1, kind: input, shape index: {}]   ;;  %s220_s0 = inlined_call_operand.vmem [shape: bf16[32,64], index: 0, kind: input, shape index: {}]   ;;  %s221_s2 = inlined_call_operand.vmem [shape: f32[1,32], index: 2, kind: input, shape index: {}]   ;;  %s222_s3 = inlined_call_operand.vmem [shape: f32[32,32], index: 3, kind: output, shape index: {}]  }
   0x1   :  { %v160_v0 = vld [vmem:[%s219_s1] sm:$0xff]   ;;  %v161_v1 = vld [vmem:[%s219_s1 + $0x8] sm:$0xff]   ;;  %v162_v2 = vld [vmem:[%s219_s1 + $0x10] sm:$0xff]  }
   0x2   :  { %148 = vmatprep.subr.bf16.mxu0 %v160_v0  ;;  %v164_v3 = vld [vmem:[%s220_s0] sm:$0xff]   ;;  %v163_v4 = vld [vmem:[%s219_s1 + $0x18] sm:$0xff]   ;;  %v165_v5 = vld [vmem:[%s220_s0 + $0x8] sm:$0xff]  }
   0x3   :  { %149 = vmatpush3.bf16.msra.mxu0 %v160_v0  ;;  %156 = vmatprep.mubr.msk.bf16.mxu0 %vm68_vm0, %v164_v3  ;;  %v133_v6 = vld [vmem:[%s221_s2] ss:$0 sm:$0xff] }
   0x4   :  { %150 = vmatprep.subr.bf16.mxu0 %v161_v1 }
   0x7   :  { %151 = vmatpush3.bf16.msra.mxu0 %v161_v1 }
   0x8   :  { %152 = vmatprep.subr.bf16.mxu0 %v162_v2 }
   0xb   :  { %153 = vmatpush3.bf16.msra.mxu0 %v162_v2 }
   0xc   :  { %154 = vmatprep.subr.bf16.mxu0 %v163_v4 }
   0xf   :  { %155 = vmatpush3.bf16.msra.mxu0 %v163_v4 }
  0x12   :  { %157 = vmatmul.mubr.msk.bf16.vlgmr.msra.gmra.mrb[0].mxu0 %vm68_vm0, %v165_v5 }
  0xe5   :  { %v158_v7 = vpop.f32.mrb[0].mxu0 }
  0xe6   :  { %v118_v8 = vadd.f32 %v158_v7, %v133_v6  ;;  %v109_v9 = vpop.f32.mrb[1].mxu0 }
  0xe7   :  { %v110_v10 = vadd.f32 %v133_v6, %v109_v9  ;;  %v159_v11 = vpop.f32.mrb[2].mxu0 }
  0xe8   :  { %127 = vst.msk [vmem:[%s222_s3 + $0x10] sm:$0xff] %vm124_vm1, %v118_v8  ;;  %v121_v12 = vadd.f32 %v159_v11, %v133_v6  ;;  %v112_v13 = vpop.f32.mrb[3].mxu0 }
  0xe9   :  { %125 = vst.msk [vmem:[%s222_s3] sm:$0xff] %vm124_vm1, %v110_v10  ;;  %v113_v14 = vadd.f32 %v133_v6, %v112_v13 }
  0xea   :  { %128 = vst.msk [vmem:[%s222_s3 + $0x18] sm:$0xff] %vm124_vm1, %v121_v12 }
  0xeb   :  { %126 = vst.msk [vmem:[%s222_s3 + $0x8] sm:$0xff] %vm124_vm1, %v113_v14 }

// kernel: vit_encoder_forward.3
= control target key start
LH: loop header
LB: loop body
LE: loop exit
PB: predicated region body
PF: predicated region fallthrough
CT: control target
= control target key end

     0   :  { %11 = vsyncpa [#allocation4], 0  ;;  %s3764_s21 = smov 0   ;;  %s3766_s22 = smov 0   ;;  %s4749_s0 = inlined_call_operand.vmem [shape: f32[2,32,32], index: 0, kind: input, shape index: {}]   ;;  %s4750_s1 = inlined_call_operand.vmem [shape: bf16[2,32,96], index: 1, kind: input, shape index: {}]   ;;  %s4751_s2 = inlined_call_operand.vmem [shape: bf16[2,32,32], index: 2, kind: input, shape index: {}]   ;;  %s4752_s3 = inlined_call_operand.vmem [shape: bf16[2,32,128], index: 3, kind: input, shape index: {}]   ;;  %s4753_s4 = inlined_call_operand.vmem [shape: bf16[2,128,32], index: 4, kind: input, shape index: {}]   ;;  %s4754_s5 = inlined_call_operand.vmem [shape: f32[2,10,128], index: 5, kind: input, shape index: {}]   ;;  %s4755_s6 = inlined_call_operand.hbm [shape: f32[2,1,32], index: 6, kind: output, shape index: {}]  }
   0x1   :  { %s3768_s23 = smov 0  }
   0x2 LB: > { %s2936_s24 = sadd.s32 4294967295, %s3717_s23   ;;  %s26_s25 = sadd.s32 1, %s3713_s22  ;;  %s3717_s23 = sphi %s3768_s23, %s17_s23   ;;  %s3713_s22 = sphi %s3766_s22, %s4758_s22   ;;  %s3709_s21 = sphi %s3764_s21, %s4757_s21  }
   0x3   : > { %p27_p0 = scmp.ge.s32.totalorder %s26_s25, 2  ;;  %p2940_p1 = scmp.ge.s32.totalorder %s3717_s23, 1 }
   0x4   : > { %p277_p2 = scmp.lt.s32.totalorder %s3717_s23, 3 }
   0x5   : > { %s4760_s25 = smov (%p27_p0, %s26_s25), 0 }
   0x6   : > { %p278_p3 = pnand %p2940_p1, %p277_p2 }
   0x7   : > { %p335_p4 = scmp.lt.s32.totalorder (!%p278_p3), %s3709_s21, 1  ;;  %p2951_p5 = scmp.ne.s32.totalorder (!%p278_p3), %s3709_s21, 0 }
   0x8   : > { %281 = sbr.rel (%p278_p3) target bundleno = 3075 (0xc03), region = 44 }
   0xf   : > { %s336_s26 = scalar_select %p335_p4, %s3709_s21, 1 }
  0x10   : > { %365 = sbr.rel (%p2951_p5) target bundleno = 23 (0x17), region = 48  ;;  %v366_v0 = vld [vmem:[%s4749_s0] sm:$0xff] (!%p2951_p5)  ;;  %vm374_vm0 = vcmask (!%p2951_p5), 261120   ;;  %v367_v1 = vld [vmem:[%s4749_s0 + $0x8] sm:$0xff] (!%p2951_p5)  ;;  %v368_v2 = vld [vmem:[%s4749_s0 + $0x10] sm:$0xff] (!%p2951_p5) }
  0x11   : > { %s3015_s27 = sshll.u32 %s336_s26, 4  ;;  %s3018_s28 = sshll.u32 %s336_s26, 6  ;;  %375 = vst.msk [vmem:[#allocation2] sm:$0xff] (!%p2951_p5), %vm374_vm0, %v366_v0  ;;  %376 = vst.msk [vmem:[#allocation2 + $0x8] sm:$0xff] (!%p2951_p5), %vm374_vm0, %v367_v1  ;;  %v369_v3 = vld [vmem:[%s4749_s0 + $0x18] sm:$0xff] (!%p2951_p5)  ;;  %v370_v4 = vld [vmem:[%s4749_s0 + $0x20] sm:$0xff] (!%p2951_p5) }
  0x12   : > { %s339_s7 = scalar_lea.vmem %s4750_s1, %s3015_s27  ;;  %s3793_s10 = scalar_lea.vmem %s4751_s2, %s3015_s27  ;;  %377 = vst.msk [vmem:[#allocation2 + $0x10] sm:$0xff] (!%p2951_p5), %vm374_vm0, %v368_v2  ;;  %v371_v5 = vld [vmem:[%s4749_s0 + $0x28] sm:$0xff] (!%p2951_p5)  ;;  %378 = vst.msk [vmem:[#allocation2 + $0x18] sm:$0xff] (!%p2951_p5), %vm374_vm0, %v369_v3  ;;  %v372_v6 = vld [vmem:[%s4749_s0 + $0x30] sm:$0xff] (!%p2951_p5) }
  0x13   : > { %s3798_s13 = scalar_lea.vmem %s4752_s3, %s3015_s27  ;;  %s3803_s16 = scalar_lea.vmem %s4753_s4, %s3018_s28  ;;  %379 = vst.msk [vmem:[#allocation2 + $0x20] sm:$0xff] (!%p2951_p5), %vm374_vm0, %v370_v4  ;;  %380 = vst.msk [vmem:[#allocation2 + $0x28] sm:$0xff] (!%p2951_p5), %vm374_vm0, %v371_v5  ;;  %v373_v7 = vld [vmem:[%s4749_s0 + $0x38] sm:$0xff] (!%p2951_p5) }
  0x14   : > { %s3808_s19 = scalar_lea.vmem %s4754_s5, %s3015_s27  ;;  %381 = vst.msk [vmem:[#allocation2 + $0x30] sm:$0xff] (!%p2951_p5), %vm374_vm0, %v372_v6  ;;  %382 = vst.msk [vmem:[#allocation2 + $0x38] sm:$0xff] (!%p2951_p5), %vm374_vm0, %v373_v7 }
  0x17 PF: > { %v3836_v8 = vld [vmem:[%s3808_s19 + $0x8] sm:$0x3]  ;;  %v3478_v9 = vld [vmem:[%s339_s7] sm:$0xff]   ;;  %vm417_vm1 = vcmask 261120   ;;  %v401_v23 = vlaneseq  ;;  %vm597_vm2 = vcmask 64512   ;;  %s3720_s29 = smov 120  }
  0x18   : > { %v3479_v10 = vld [vmem:[%s339_s7 + $0x8] sm:$0xff]   ;;  %v383_v11 = vld [vmem:[#allocation2] sm:$0xff]  ;;  %3114 = vmatprep.subr.bf16.mxu0 %v3478_v9  ;;  %s3719_s7 = smov 112   ;;  %s3721_s30 = smov 104   ;;  %vm2125_vm4 = vcmask 130048   ;;  %vm2134_vm5 = vcmask 195584  }
  0x19   : > { %v384_v12 = vld [vmem:[#allocation2 + $0x8] sm:$0xff]  ;;  %3115 = vmatpush3.bf16.msra.mxu0 %v3478_v9  ;;  %v385_v14 = vld [vmem:[#allocation2 + $0x10] sm:$0xff]  ;;  %v386_v15 = vld [vmem:[#allocation2 + $0x18] sm:$0xff]  ;;  %v3843_v24 = vshrl.u32 %v401_v23, 7  ;;  %s3722_s8 = smov 96   ;;  %s3723_s28 = smov 64  }
  0x1a   : > { %v391_v13 = vpack.c.bf16 %v384_v12, %v383_v11  ;;  %v387_v16 = vld [vmem:[#allocation2 + $0x20] sm:$0xff]  ;;  %3116 = vmatprep.subr.bf16.mxu0 %v3479_v10  ;;  %v388_v17 = vld [vmem:[#allocation2 + $0x28] sm:$0xff]  ;;  %v392_v18 = vpack.c.bf16 %v386_v15, %v385_v14  ;;  %s3724_s27 = smov 8   ;;  %s3725_s9 = smov 16  }
  0x1b   : > { %v393_v19 = vpack.c.bf16 %v388_v17, %v387_v16  ;;  %v389_v20 = vld [vmem:[#allocation2 + $0x30] sm:$0xff]  ;;  %v390_v21 = vld [vmem:[#allocation2 + $0x38] sm:$0xff]  ;;  %v403_v25 = vsub.s32 0, %v3843_v24  ;;  %v395_v26 = vld [vmem:[%s3808_s19] sm:$0xff]  ;;  %s3726_s11 = smov 24   ;;  %p3010_p6 = scmp.ne.s32.totalorder %s3709_s21, 1 }
  0x1c   : > { %3118 = vmatprep.mubr.msk.bf16.mxu0 %vm417_vm1, %v391_v13  ;;  %v394_v22 = vpack.c.bf16 %v390_v21, %v389_v20  ;;  %vm2775_vm6 = vcmask (!%p3010_p6), 253952  }
  0x1d   : > { %3117 = vmatpush3.bf16.msra.mxu0 %v3479_v10  ;;  %v404_v27 = vrot.slane %v395_v26, %v403_v25 }
  0x20   : > { %3119 = vmatmul.mubr.msk.bf16.vlgmr.msra.gmra.mrb[0].mxu0 %vm417_vm1, %v392_v18 }
  0x21   : > { %3122 = vmatprep.mubr.msk.bf16.mxu0 %vm417_vm1, %v393_v19 }
  0x28   : > { %3123 = vmatmul.mubr.msk.bf16.gmra.mrb[4].mxu0 %vm417_vm1, %v394_v22 }
  0xf3   : > { %v3120_v28 = vpop.f32.mrb[0].mxu0 }
  0xf4   : > { %v464_v29 = vpop.f32.mrb[1].mxu0  ;;  %v473_v31 = vadd.f32 %v3120_v28, %v404_v27 }
  0xf5   : > { %v3121_v30 = vpop.f32.mrb[2].mxu0  ;;  %v465_v34 = vadd.f32 %v464_v29, %v404_v27 }
  0xf6   : > { %v476_v32 = vadd.f32 %v3121_v30, %v404_v27  ;;  %v467_v33 = vpop.f32.mrb[3].mxu0 }
  0xf7   : > { %v468_v35 = vadd.f32 %v467_v33, %v404_v27 }
  0xf8   : > { %v3363_v36 = vpack.i.bf16 %v476_v32, %v473_v31  ;;  %v3847_v37 = vpack.c.bf16 %v476_v32, %v473_v31 }
  0xf9   : > { %v3368_v38 = vpack.i.bf16 %v468_v35, %v465_v34  ;;  %v3849_v39 = vpack.c.bf16 %v468_v35, %v465_v34 }
  0xfb   : > { %3369 = vrot.lane.b32.xlu1 %v3368_v38, %s3719_s7  ;;  %3359 = vrot.lane.b32.xlu0 %v3368_v38, %s3720_s29  ;;  %v3124_v40 = vpop.f32.mrb[4].mxu0 }
  0xfc   : > { %3130 = vmatprep.mubr.msk.bf16.mxu0 %vm597_vm2, %v3849_v39  ;;  %v489_v41 = vadd.f32 %v3124_v40, %v404_v27  ;;  %v480_v42 = vpop.f32.mrb[5].mxu0 }
  0xfd   : > { %v481_v43 = vadd.f32 %v480_v42, %v404_v27  ;;  %v3125_v44 = vpop.f32.mrb[6].mxu0 }
  0xfe   : > { %v492_v45 = vadd.f32 %v3125_v44, %v404_v27  ;;  %v483_v46 = vpop.f32.mrb[7].mxu0 }
  0xff   : > { %v484_v47 = vadd.f32 %v483_v46, %v404_v27  ;;  %3374 = vrot.lane.b32.xlu1 %v3368_v38, %s3721_s30  ;;  %3364 = vrot.lane.b32.xlu0 %v3363_v36, %s3720_s29 }
 0x100   : > { %v3393_v48 = vpack.i.bf16 %v492_v45, %v489_v41  ;;  %v3854_v49 = vpack.c.bf16 %v492_v45, %v489_v41 }
 0x101   : > { %v3388_v50 = vpack.i.bf16 %v484_v47, %v481_v43  ;;  %v3856_v51 = vpack.c.bf16 %v484_v47, %v481_v43 }
 0x103   : > { %3384 = vrot.lane.b32.xlu1 %v3363_v36, %s3721_s30  ;;  %3379 = vrot.lane.b32.xlu0 %v3363_v36, %s3719_s7 }
 0x107   : > { %3394 = vrot.lane.b32.xlu1 %v3393_v48, %s3720_s29  ;;  %3389 = vrot.lane.b32.xlu0 %v3388_v50, %s3720_s29 }
 0x10b   : > { %3399 = vrot.lane.b32.xlu1 %v3388_v50, %s3719_s7  ;;  %593 = vrot.lane.b32.xlu0 %v3849_v39, %s3722_s8 }
 0x10f   : > { %595 = vrot.lane.b32.xlu1 %v3847_v37, %s3722_s8  ;;  %3404 = vrot.lane.b32.xlu0 %v3388_v50, %s3721_s30 }
 0x113   : > { %3414 = vrot.lane.b32.xlu1 %v3393_v48, %s3721_s30  ;;  %3409 = vrot.lane.b32.xlu0 %v3393_v48, %s3719_s7 }
 0x16d   : > { %v3370_v52 = vpop.permute.xlu1 %3369  ;;  %v3360_v53 = vpop.permute.xlu0 %3359 }
 0x16e   : > { %v3372_v54 = vunpack.i.h.bf16 %v3370_v52  ;;  %v3371_v55 = vunpack.i.l.bf16 %v3370_v52  ;;  %v3362_v56 = vunpack.i.h.bf16 %v3360_v53  ;;  %v3361_v57 = vunpack.i.l.bf16 %v3360_v53 }
 0x170   : > { %v3865_v58 = vpack.c.bf16 %v3372_v54, %v3371_v55  ;;  %v3867_v59 = vpack.c.bf16 %v3362_v56, %v3361_v57 }
 0x171   : > { %v3375_v60 = vpop.permute.xlu1 %3374  ;;  %v3365_v61 = vpop.permute.xlu0 %3364 }
 0x172   : > { %v3367_v62 = vunpack.i.h.bf16 %v3365_v61  ;;  %v3366_v63 = vunpack.i.l.bf16 %v3365_v61  ;;  %3146 = vmatprep.mubr.msk.bf16.mxu1 %vm597_vm2, %v3865_v58  ;;  %661 = vrot.lane.b32.xlu0 %v3867_v59, %s3722_s8  ;;  %v3377_v0 = vunpack.i.h.bf16 %v3375_v60  ;;  %v3376_v1 = vunpack.i.l.bf16 %v3375_v60 }
 0x174   : > { %v3873_v2 = vpack.c.bf16 %v3367_v62, %v3366_v63  ;;  %v3879_v10 = vpack.c.bf16 %v3377_v0, %v3376_v1 }
 0x175   : > { %v3385_v3 = vpop.permute.xlu1 %3384  ;;  %v3380_v4 = vpop.permute.xlu0 %3379 }
 0x176   : > { %v3382_v5 = vunpack.i.h.bf16 %v3380_v4  ;;  %v3381_v6 = vunpack.i.l.bf16 %v3380_v4  ;;  %663 = vrot.lane.b32.xlu1 %v3873_v2, %s3722_s8  ;;  %728 = vrot.lane.b32.xlu0 %v3865_v58, %s3722_s8  ;;  %v3387_v7 = vunpack.i.h.bf16 %v3385_v3  ;;  %v3386_v9 = vunpack.i.l.bf16 %v3385_v3 }
 0x178   : > { %v3881_v11 = vpack.c.bf16 %v3382_v5, %v3381_v6  ;;  %v3887_v16 = vpack.c.bf16 %v3387_v7, %v3386_v9 }
 0x179   : > { %v3395_v12 = vpop.permute.xlu1 %3394  ;;  %v3390_v13 = vpop.permute.xlu0 %3389 }
 0x17a   : > { %795 = vrot.lane.b32.xlu1 %v3879_v10, %s3722_s8  ;;  %730 = vrot.lane.b32.xlu0 %v3881_v11, %s3722_s8  ;;  %v3392_v14 = vunpack.i.h.bf16 %v3390_v13  ;;  %v3391_v15 = vunpack.i.l.bf16 %v3390_v13  ;;  %v3397_v20 = vunpack.i.h.bf16 %v3395_v12  ;;  %v3396_v21 = vunpack.i.l.bf16 %v3395_v12 }
 0x17c   : > { %v3895_v26 = vpack.c.bf16 %v3392_v14, %v3391_v15  ;;  %v3902_v31 = vpack.c.bf16 %v3397_v20, %v3396_v21  ;;  %v4010_v14 = vand.u32 127, %v401_v23 }
 0x17d   : > { %v3400_v17 = vpop.permute.xlu1 %3399  ;;  %v594_v18 = vpop.permute.xlu0 %593 }
 0x17e   : > { %797 = vrot.lane.b32.xlu1 %v3887_v16, %s3722_s8  ;;  %862 = vrot.lane.b32.xlu0 %v3856_v51, %s3722_s8  ;;  %v605_v19 = vsel %vm597_vm2, %v594_v18, 0  ;;  %v3402_v22 = vunpack.i.h.bf16 %v3400_v17  ;;  %v3401_v25 = vunpack.i.l.bf16 %v3400_v17  ;;  %vm1130_vm3 = vcmp.lt.s32.totalorder %v4010_v14, 17 }
 0x17f   : > { %3302 = vmatprep.subr.msk.bf16.mxu0 %vm597_vm2, %v594_v18 }
 0x180   : > { %3127 = vmatpush3.bf16.xpose.msra.mxu0 %v605_v19  ;;  %v3904_v32 = vpack.c.bf16 %v3402_v22, %v3401_v25 }
 0x181   : > { %v596_v27 = vpop.permute.xlu1 %595  ;;  %v3405_v28 = vpop.permute.xlu0 %3404 }
 0x182   : > { %929 = vrot.lane.b32.xlu1 %v3895_v26, %s3722_s8  ;;  %864 = vrot.lane.b32.xlu0 %v3854_v49, %s3722_s8  ;;  %v3407_v29 = vunpack.i.h.bf16 %v3405_v28  ;;  %v3406_v30 = vunpack.i.l.bf16 %v3405_v28  ;;  %v608_v38 = vsel %vm597_vm2, %v596_v27, 0 }
 0x183   : > { %3303 = vmatprep.subr.msk.bf16.mxu0 %vm597_vm2, %v596_v27 }
 0x184   : > { %v3913_v43 = vpack.c.bf16 %v3407_v29, %v3406_v30 }
 0x185   : > { %v3415_v33 = vpop.permute.xlu1 %3414  ;;  %v3410_v34 = vpop.permute.xlu0 %3409 }
 0x186   : > { %v3412_v35 = vunpack.i.h.bf16 %v3410_v34  ;;  %v3411_v36 = vunpack.i.l.bf16 %v3410_v34  ;;  %931 = vrot.lane.b32.xlu1 %v3902_v31, %s3722_s8  ;;  %996 = vrot.lane.b32.xlu0 %v3904_v32, %s3722_s8  ;;  %v3417_v40 = vunpack.i.h.bf16 %v3415_v33  ;;  %v3416_v41 = vunpack.i.l.bf16 %v3415_v33 }
 0x188   : > { %3129 = vmatpush3.bf16.xpose.msra.mxu0 %v608_v38  ;;  %v3911_v42 = vpack.c.bf16 %v3412_v35, %v3411_v36  ;;  %v3919_v44 = vpack.c.bf16 %v3417_v40, %v3416_v41 }
 0x18a   : > { %998 = vrot.lane.b32.xlu0 %v3911_v42, %s3722_s8  ;;  %1063 = vrot.lane.b32.xlu1 %v3913_v43, %s3722_s8 }
 0x18e   : > { %1594 = vrot.lane.b32.xlu0 %v3867_v59, %s3723_s28  ;;  %1065 = vrot.lane.b32.xlu1 %v3919_v44, %s3722_s8 }
 0x18f   : > { %3131 = vmatmul.mubr.msk.bf16.vlgmr.msra.gmra.mrb[8].mxu0 %vm597_vm2, %v3847_v37 }
 0x190   : > { %3138 = vmatprep.mubr.msk.bf16.mxu0 %vm597_vm2, %v3867_v59 }
 0x192   : > { %1596 = vrot.lane.b32.xlu0 %v3873_v2, %s3723_s28  ;;  %1533 = vrot.lane.b32.xlu1 %v3849_v39, %s3723_s28 }
 0x196   : > { %1657 = vrot.lane.b32.xlu0 %v3881_v11, %s3723_s28  ;;  %1535 = vrot.lane.b32.xlu1 %v3847_v37, %s3723_s28 }
 0x19a   : > { %1777 = vrot.lane.b32.xlu0 %v3856_v51, %s3723_s28  ;;  %1655 = vrot.lane.b32.xlu1 %v3865_v58, %s3723_s28 }
 0x19e   : > { %1779 = vrot.lane.b32.xlu0 %v3854_v49, %s3723_s28  ;;  %1716 = vrot.lane.b32.xlu1 %v3879_v10, %s3723_s28 }
 0x1a2   : > { %1718 = vrot.lane.b32.xlu1 %v3887_v16, %s3723_s28 }
 0x1a6   : > { %1840 = vrot.lane.b32.xlu1 %v3902_v31, %s3723_s28 }
 0x1aa   : > { %1838 = vrot.lane.b32.xlu1 %v3895_v26, %s3723_s28 }
 0x1e4   : > { %v662_v37 = vpop.permute.xlu0 %661 }
 0x1e5   : > { %3304 = vmatprep.subr.msk.bf16.mxu0 %vm597_vm2, %v662_v37  ;;  %v672_v39 = vsel %vm597_vm2, %v662_v37, 0 }
 0x1e6   : > { %3135 = vmatpush3.bf16.xpose.msra.mxu0 %v672_v39 }
 0x1e8   : > { %v664_v45 = vpop.permute.xlu1 %663  ;;  %v729_v46 = vpop.permute.xlu0 %728 }
 0x1e9   : > { %3305 = vmatprep.subr.msk.bf16.mxu0 %vm597_vm2, %v664_v45  ;;  %3306 = vmatprep.subr.msk.bf16.mxu1 %vm597_vm2, %v729_v46  ;;  %v739_v47 = vsel %vm597_vm2, %v729_v46, 0  ;;  %v675_v50 = vsel %vm597_vm2, %v664_v45, 0 }
 0x1ea   : > { %3143 = vmatpush3.bf16.xpose.msra.mxu1 %v739_v47 }
 0x1ec   : > { %v731_v48 = vpop.permute.xlu0 %730  ;;  %v796_v52 = vpop.permute.xlu1 %795 }
 0x1ed   : > { %3307 = vmatprep.subr.msk.bf16.mxu1 %vm597_vm2, %v731_v48  ;;  %v742_v53 = vsel %vm597_vm2, %v731_v48, 0  ;;  %v806_v56 = vsel %vm597_vm2, %v796_v52, 0 }
 0x1ee   : > { %3137 = vmatpush3.bf16.xpose.msra.mxu0 %v675_v50 }
 0x1ef   : > { %3308 = vmatprep.subr.msk.bf16.mxu0 %vm597_vm2, %v796_v52 }
 0x1f0   : > { %v863_v54 = vpop.permute.xlu0 %862  ;;  %v798_v55 = vpop.permute.xlu1 %797 }
 0x1f1   : > { %v873_v57 = vsel %vm597_vm2, %v863_v54, 0  ;;  %v809_v60 = vsel %vm597_vm2, %v798_v55, 0 }
 0x1f2   : > { %3145 = vmatpush3.bf16.xpose.msra.mxu1 %v742_v53 }
 0x1f3   : > { %3310 = vmatprep.subr.msk.bf16.mxu1 %vm597_vm2, %v863_v54 }
 0x1f4   : > { %v930_v58 = vpop.permute.xlu1 %929  ;;  %v865_v59 = vpop.permute.xlu0 %864 }
 0x1f5   : > { %3139 = vmatmul.mubr.msk.bf16.vlgmr.msra.gmra.mrb[12].mxu0 %vm597_vm2, %v3873_v2  ;;  %v876_v62 = vsel %vm597_vm2, %v865_v59, 0  ;;  %v940_v0 = vsel %vm597_vm2, %v930_v58, 0 }
 0x1f6   : > { %3151 = vmatpush3.bf16.xpose.msra.mxu0 %v806_v56  ;;  %3154 = vmatprep.mubr.msk.bf16.mxu0 %vm597_vm2, %v3879_v10 }
 0x1f7   : > { %3309 = vmatprep.subr.msk.bf16.mxu0 %vm597_vm2, %v798_v55 }
 0x1f8   : > { %v932_v61 = vpop.permute.xlu1 %931  ;;  %v997_v63 = vpop.permute.xlu0 %996 }
 0x1f9   : > { %3147 = vmatmul.mubr.msk.bf16.vlgmr.msra.gmra.mrb[0].mxu1 %vm597_vm2, %v3881_v11  ;;  %v1007_v1 = vsel %vm597_vm2, %v997_v63, 0  ;;  %v943_v4 = vsel %vm597_vm2, %v932_v61, 0 }
 0x1fa   : > { %3159 = vmatpush3.bf16.xpose.msra.mxu1 %v873_v57  ;;  %3162 = vmatprep.mubr.msk.bf16.mxu1 %vm597_vm2, %v3856_v51 }
 0x1fb   : > { %3311 = vmatprep.subr.msk.bf16.mxu1 %vm597_vm2, %v865_v59 }
 0x1fc   : > { %v1064_v51 = vpop.permute.xlu1 %1063  ;;  %v999_v2 = vpop.permute.xlu0 %998 }
 0x1fd   : > { %v1010_v5 = vsel %vm597_vm2, %v999_v2, 0 }
 0x1fe   : > { %3153 = vmatpush3.bf16.xpose.msra.mxu0 %v809_v60 }
 0x1ff   : > { %3312 = vmatprep.subr.msk.bf16.mxu0 %vm597_vm2, %v930_v58 }
 0x200   : > { %v1066_v3 = vpop.permute.xlu1 %1065  ;;  %v1595_v10 = vpop.permute.xlu0 %1594 }
 0x201   : > { %v1077_v9 = vsel %vm597_vm2, %v1066_v3, 0 }
 0x202   : > { %3161 = vmatpush3.bf16.xpose.msra.mxu1 %v876_v62 }
 0x203   : > { %3314 = vmatprep.subr.msk.bf16.mxu1 %vm597_vm2, %v997_v63 }
 0x204   : > { %v1534_v6 = vpop.permute.xlu1 %1533  ;;  %v1597_v12 = vpop.permute.xlu0 %1596 }
 0x205   : > { %3155 = vmatmul.mubr.msk.bf16.vlgmr.msra.gmra.mrb[16].mxu0 %vm597_vm2, %v3887_v16 }
 0x206   : > { %3167 = vmatpush3.bf16.xpose.msra.mxu0 %v940_v0  ;;  %3170 = vmatprep.mubr.msk.bf16.mxu0 %vm597_vm2, %v3895_v26 }
 0x207   : > { %3313 = vmatprep.subr.msk.bf16.mxu0 %vm597_vm2, %v932_v61 }
 0x208   : > { %v1536_v7 = vpop.permute.xlu1 %1535 }
 0x209   : > { %3163 = vmatmul.mubr.msk.bf16.vlgmr.msra.gmra.mrb[4].mxu1 %vm597_vm2, %v3854_v49  ;;  %v1074_v49 = vsel %vm597_vm2, %v1064_v51, 0 }
 0x20a   : > { %3175 = vmatpush3.bf16.xpose.msra.mxu1 %v1007_v1  ;;  %3178 = vmatprep.mubr.msk.bf16.mxu1 %vm597_vm2, %v3904_v32 }
 0x20b   : > { %3315 = vmatprep.subr.msk.bf16.mxu1 %vm597_vm2, %v999_v2 }
 0x20c   : > { %v4001_v11 = vpop.permute.xlu1 %1655 }
 0x20e   : > { %3169 = vmatpush3.bf16.xpose.msra.mxu0 %v943_v4 }
 0x20f   : > { %3316 = vmatprep.subr.msk.bf16.mxu0 %vm597_vm2, %v1064_v51 }
 0x210   : > { %v4006_v13 = vpop.permute.xlu1 %1716 }
 0x212   : > { %3177 = vmatpush3.bf16.xpose.msra.mxu1 %v1010_v5 }
 0x213   : > { %3190 = vmatprep.subr.bf16.mxu1 %v1534_v6 }
 0x215   : > { %3171 = vmatmul.mubr.msk.bf16.vlgmr.msra.gmra.mrb[20].mxu0 %vm597_vm2, %v3902_v31 }
 0x216   : > { %3183 = vmatpush3.bf16.xpose.msra.mxu0 %v1074_v49  ;;  %3186 = vmatprep.mubr.msk.bf16.mxu0 %vm597_vm2, %v3913_v43 }
 0x217   : > { %3317 = vmatprep.subr.msk.bf16.mxu0 %vm597_vm2, %v1066_v3 }
 0x219   : > { %3179 = vmatmul.mubr.msk.bf16.vlgmr.msra.gmra.mrb[8].mxu1 %vm597_vm2, %v3911_v42 }
 0x21a   : > { %3191 = vmatpush3.bf16.msra.mxu1 %v1534_v6 }
 0x21b   : > { %3192 = vmatprep.subr.bf16.mxu1 %v1536_v7 }
 0x21e   : > { %3185 = vmatpush3.bf16.xpose.msra.mxu0 %v1077_v9  ;;  %3193 = vmatpush3.bf16.msra.mxu1 %v1536_v7 }
 0x21f   : > { %3198 = vmatprep.subr.bf16.mxu0 %v1595_v10  ;;  %3206 = vmatprep.subr.bf16.mxu1 %v4001_v11 }
 0x225   : > { %3187 = vmatmul.mubr.msk.bf16.vlgmr.msra.gmra.mrb[24].mxu0 %vm597_vm2, %v3919_v44 }
 0x226   : > { %3199 = vmatpush3.bf16.msra.mxu0 %v1595_v10 }
 0x227   : > { %3200 = vmatprep.subr.bf16.mxu0 %v1597_v12 }
 0x22a   : > { %3201 = vmatpush3.bf16.msra.mxu0 %v1597_v12  ;;  %v4117_v12 = vpop.permute.xlu0 %1657 }
 0x22b   : > { %3214 = vmatprep.subr.bf16.mxu0 %v4006_v13 }
 0x262   : > { %v3132_v15 = vpop.f32.mrb[8].mxu0 }
 0x263   : > { %v4015_v16 = vsel %vm1130_vm3, %v3132_v15, -1e+30  ;;  %v644_v17 = vpop.f32.mrb[9].mxu0 }
 0x264   : > { %v3133_v18 = vpop.f32.mrb[10].mxu0  ;;  %v1171_v19 = vsel %vm417_vm1, %v4015_v16, -inf  ;;  %v4021_v20 = vsel %vm1130_vm3, %v644_v17, -1e+30 }
 0x265   : > { %1172 = vmax.xlane.f32.xlu0 %v1171_v19  ;;  %v647_v21 = vpop.f32.mrb[11].mxu0  ;;  %v1165_v25 = vsel %vm417_vm1, %v4021_v20, -inf  ;;  %v4033_v26 = vsel %vm1130_vm3, %v3133_v18, -1e+30 }
 0x266   : > { %v4025_v23 = vsel %vm1130_vm3, %v647_v21, -1e+30  ;;  %v1174_v27 = vsel %vm417_vm1, %v4033_v26, -inf  ;;  %v4131_v21 = vpop.permute.xlu1 %1718 }
 0x267   : > { %v1168_v22 = vsel %vm417_vm1, %v4025_v23, -inf }
 0x268   : > { %1169 = vmax.xlane.f32.xlu1 %v1168_v22 }
 0x269   : > { %1166 = vmax.xlane.f32.xlu0 %v1165_v25  ;;  %v4135_v25 = vpop.permute.xlu0 %1777 }
 0x26d   : > { %1175 = vmax.xlane.f32.xlu0 %v1174_v27 }
 0x2c8   : > { %v3140_v28 = vpop.f32.mrb[12].mxu0 }
 0x2c9   : > { %v4039_v29 = vsel %vm1130_vm3, %v3140_v28, -1e+30  ;;  %v711_v30 = vpop.f32.mrb[13].mxu0 }
 0x2ca   : > { %v3141_v31 = vpop.f32.mrb[14].mxu0  ;;  %v1183_v33 = vsel %vm417_vm1, %v4039_v29, -inf  ;;  %v4057_v45 = vsel %vm1130_vm3, %v711_v30, -1e+30 }
 0x2cb   : > { %v4045_v34 = vsel %vm1130_vm3, %v3141_v31, -1e+30  ;;  %1184 = vmax.xlane.f32.xlu1 %v1183_v33  ;;  %v714_v35 = vpop.f32.mrb[15].mxu0  ;;  %v1177_v52 = vsel %vm417_vm1, %v4057_v45, -inf }
 0x2cc   : > { %v3148_v36 = vpop.f32.mrb[0].mxu1  ;;  %v1186_v38 = vsel %vm417_vm1, %v4045_v34, -inf  ;;  %v4067_v50 = vsel %vm1130_vm3, %v714_v35, -1e+30 }
 0x2cd   : > { %v4051_v40 = vsel %vm1130_vm3, %v3148_v36, -1e+30  ;;  %v778_v41 = vpop.f32.mrb[1].mxu1  ;;  %1187 = vmax.xlane.f32.xlu0 %v1186_v38  ;;  %v1180_v54 = vsel %vm417_vm1, %v4067_v50, -inf }
 0x2ce   : > { %v3149_v37 = vpop.f32.mrb[2].mxu1  ;;  %v1195_v39 = vsel %vm417_vm1, %v4051_v40, -inf  ;;  %v4073_v53 = vsel %vm1130_vm3, %v778_v41, -1e+30  ;;  %v4149_v41 = vpop.permute.xlu1 %1840 }
 0x2cf   : > { %v4061_v46 = vsel %vm1130_vm3, %v3149_v37, -1e+30  ;;  %v781_v47 = vpop.f32.mrb[3].mxu1  ;;  %1196 = vmax.xlane.f32.xlu1 %v1195_v39  ;;  %v1189_v56 = vsel %vm417_vm1, %v4073_v53, -inf }
 0x2d0   : > { %v1198_v48 = vsel %vm417_vm1, %v4061_v46, -inf  ;;  %v4079_v55 = vsel %vm1130_vm3, %v781_v47, -1e+30 }
 0x2d1   : > { %1199 = vmax.xlane.f32.xlu0 %v1198_v48  ;;  %v1192_v58 = vsel %vm417_vm1, %v4079_v55, -inf }
 0x2d3   : > { %1178 = vmax.xlane.f32.xlu1 %v1177_v52  ;;  %v4157_v52 = vpop.permute.xlu0 %1779 }
 0x2d5   : > { %1181 = vmax.xlane.f32.xlu0 %v1180_v54 }
 0x2d7   : > { %1190 = vmax.xlane.f32.xlu1 %v1189_v56 }
 0x2d8   : > { %v3156_v57 = vpop.f32.mrb[16].mxu0 }
 0x2d9   : > { %v4087_v59 = vsel %vm1130_vm3, %v3156_v57, -1e+30  ;;  %1193 = vmax.xlane.f32.xlu0 %v1192_v58  ;;  %v845_v60 = vpop.f32.mrb[17].mxu0 }
 0x2da   : > { %v3157_v61 = vpop.f32.mrb[18].mxu0  ;;  %v1207_v62 = vsel %vm417_vm1, %v4087_v59, -inf  ;;  %v4105_v6 = vsel %vm1130_vm3, %v845_v60, -1e+30 }
 0x2db   : > { %v4093_v63 = vsel %vm1130_vm3, %v3157_v61, -1e+30  ;;  %1208 = vmax.xlane.f32.xlu1 %v1207_v62  ;;  %v848_v0 = vpop.f32.mrb[19].mxu0  ;;  %v1201_v15 = vsel %vm417_vm1, %v4105_v6, -inf }
 0x2dc   : > { %v3164_v51 = vpop.f32.mrb[4].mxu1  ;;  %v1210_v1 = vsel %vm417_vm1, %v4093_v63, -inf  ;;  %v4115_v10 = vsel %vm1130_vm3, %v848_v0, -1e+30  ;;  %v4175_v0 = vpop.permute.xlu1 %1838 }
 0x2dd   : > { %v4099_v2 = vsel %vm1130_vm3, %v3164_v51, -1e+30  ;;  %v912_v3 = vpop.f32.mrb[5].mxu1  ;;  %1211 = vmax.xlane.f32.xlu0 %v1210_v1  ;;  %v1204_v18 = vsel %vm417_vm1, %v4115_v10, -inf }
 0x2de   : > { %v3165_v4 = vpop.f32.mrb[6].mxu1  ;;  %v1219_v5 = vsel %vm417_vm1, %v4099_v2, -inf  ;;  %v4123_v17 = vsel %vm1130_vm3, %v912_v3, -1e+30 }
 0x2df   : > { %v4109_v49 = vsel %vm1130_vm3, %v3165_v4, -1e+30  ;;  %v915_v7 = vpop.f32.mrb[7].mxu1  ;;  %1220 = vmax.xlane.f32.xlu1 %v1219_v5  ;;  %v1213_v22 = vsel %vm417_vm1, %v4123_v17, -inf }
 0x2e0   : > { %v1222_v9 = vsel %vm417_vm1, %v4109_v49, -inf  ;;  %v4129_v19 = vsel %vm1130_vm3, %v915_v7, -1e+30 }
 0x2e1   : > { %1223 = vmax.xlane.f32.xlu0 %v1222_v9  ;;  %v1216_v28 = vsel %vm417_vm1, %v4129_v19, -inf }
 0x2e3   : > { %1202 = vmax.xlane.f32.xlu1 %v1201_v15 }
 0x2e5   : > { %1205 = vmax.xlane.f32.xlu0 %v1204_v18 }
 0x2e7   : > { %1214 = vmax.xlane.f32.xlu1 %v1213_v22 }
 0x2e8   : > { %v3172_v27 = vpop.f32.mrb[20].mxu0 }
 0x2e9   : > { %v4141_v30 = vsel %vm1130_vm3, %v3172_v27, -1e+30  ;;  %1217 = vmax.xlane.f32.xlu0 %v1216_v28  ;;  %v979_v31 = vpop.f32.mrb[21].mxu0 }
 0x2ea   : > { %v3173_v33 = vpop.f32.mrb[22].mxu0  ;;  %v1231_v35 = vsel %vm417_vm1, %v4141_v30, -inf  ;;  %v4163_v57 = vsel %vm1130_vm3, %v979_v31, -1e+30 }
 0x2eb   : > { %v4147_v36 = vsel %vm1130_vm3, %v3173_v33, -1e+30  ;;  %1232 = vmax.xlane.f32.xlu1 %v1231_v35  ;;  %v982_v38 = vpop.f32.mrb[23].mxu0  ;;  %v1225_v1 = vsel %vm417_vm1, %v4163_v57, -inf }
 0x2ec   : > { %v3180_v37 = vpop.f32.mrb[8].mxu1  ;;  %v1234_v39 = vsel %vm417_vm1, %v4147_v36, -inf  ;;  %v4173_v62 = vsel %vm1130_vm3, %v982_v38, -1e+30 }
 0x2ed   : > { %v4155_v47 = vsel %vm1130_vm3, %v3180_v37, -1e+30  ;;  %v1046_v48 = vpop.f32.mrb[9].mxu1  ;;  %1235 = vmax.xlane.f32.xlu0 %v1234_v39  ;;  %v1228_v5 = vsel %vm417_vm1, %v4173_v62, -inf }
 0x2ee   : > { %v3181_v54 = vpop.f32.mrb[10].mxu1  ;;  %v1243_v56 = vsel %vm417_vm1, %v4155_v47, -inf  ;;  %v4181_v3 = vsel %vm1130_vm3, %v1046_v48, -1e+30 }
 0x2ef   : > { %v4167_v58 = vsel %vm1130_vm3, %v3181_v54, -1e+30  ;;  %v1049_v60 = vpop.f32.mrb[11].mxu1  ;;  %1244 = vmax.xlane.f32.xlu1 %v1243_v56  ;;  %v1237_v22 = vsel %vm417_vm1, %v4181_v3, -inf }
 0x2f0   : > { %v1246_v61 = vsel %vm417_vm1, %v4167_v58, -inf  ;;  %v4188_v7 = vsel %vm1130_vm3, %v1049_v60, -1e+30 }
 0x2f1   : > { %1247 = vmax.xlane.f32.xlu0 %v1246_v61  ;;  %v1240_v28 = vsel %vm417_vm1, %v4188_v7, -inf }
 0x2f2   : > { %v1173_v51 = vpop.xlane.xlu0 %1172 }
 0x2f3   : > { %v1263_v4 = vsub.f32 %v4015_v16, %v1173_v51  ;;  %1226 = vmax.xlane.f32.xlu1 %v1225_v1 }
 0x2f5   : > { %v1297_v9 = vmul.f32 1.442695, %v1263_v4  ;;  %1229 = vmax.xlane.f32.xlu0 %v1228_v5  ;;  %v1170_v15 = vpop.xlane.xlu1 %1169 }
 0x2f6   : > { %v1167_v18 = vpop.xlane.xlu0 %1166  ;;  %v1262_v31 = vsub.f32 %v4025_v23, %v1170_v15 }
 0x2f7   : > { %3492 = vpow2.f32 %v1297_v9  ;;  %v1261_v27 = vsub.f32 %v4021_v20, %v1167_v18  ;;  %1238 = vmax.xlane.f32.xlu1 %v1237_v22 }
 0x2f8   : > { %v3188_v16 = vpop.f32.mrb[24].mxu0  ;;  %v1295_v54 = vmul.f32 1.442695, %v1262_v31 }
 0x2f9   : > { %v1293_v33 = vmul.f32 1.442695, %v1261_v27  ;;  %1241 = vmax.xlane.f32.xlu0 %v1240_v28  ;;  %v1113_v35 = vpop.f32.mrb[25].mxu0  ;;  %v4207_v51 = vsel %vm1130_vm3, %v3188_v16, -1e+30 }
 0x2fa   : > { %v1176_v38 = vpop.xlane.xlu0 %1175  ;;  %v3189_v37 = vpop.f32.mrb[26].mxu0  ;;  %v1255_v4 = vsel %vm417_vm1, %v4207_v51, -inf  ;;  %v4219_v9 = vsel %vm1130_vm3, %v1113_v35, -1e+30 }
 0x2fb   : > { %3494 = vpow2.f32 %v1293_v33  ;;  %v1264_v39 = vsub.f32 %v4033_v26, %v1176_v38  ;;  %v1116_v48 = vpop.f32.mrb[27].mxu0  ;;  %v1249_v18 = vsel %vm417_vm1, %v4219_v9, -inf  ;;  %v4227_v22 = vsel %vm1130_vm3, %v3189_v37, -1e+30 }
 0x2fc   : > { %v1258_v27 = vsel %vm417_vm1, %v4227_v22, -inf  ;;  %v4233_v16 = vsel %vm1130_vm3, %v1116_v48, -1e+30 }
 0x2fd   : > { %v1299_v56 = vmul.f32 1.442695, %v1264_v39  ;;  %v1252_v28 = vsel %vm417_vm1, %v4233_v16, -inf }
 0x2ff   : > { %3496 = vpow2.f32 %v1299_v56 }
 0x300   : > { %3498 = vpow2.f32 %v1295_v54 }
 0x301   : > { %v4197_v20 = vpop.eup %3492 }
 0x302   : > { %v1363_v60 = vsel %vm417_vm1, %v4197_v20, 0.0 }
 0x303   : > { %1364 = vadd.xlane.f32.xlu1 %v1363_v60 }
 0x305   : > { %v4201_v23 = vpop.eup %3494 }
 0x306   : > { %v1357_v61 = vsel %vm417_vm1, %v4201_v23, 0.0 }
 0x307   : > { %1358 = vadd.xlane.f32.xlu1 %v1357_v61 }
 0x309   : > { %v4209_v26 = vpop.eup %3496 }
 0x30a   : > { %v1366_v1 = vsel %vm417_vm1, %v4209_v26, 0.0  ;;  %v4215_v5 = vpop.eup %3498 }
 0x30b   : > { %1367 = vadd.xlane.f32.xlu0 %v1366_v1  ;;  %1256 = vmax.xlane.f32.xlu1 %v1255_v4  ;;  %v1360_v15 = vsel %vm417_vm1, %v4215_v5, 0.0 }
 0x30f   : > { %1361 = vadd.xlane.f32.xlu0 %v1360_v15  ;;  %1250 = vmax.xlane.f32.xlu1 %v1249_v18 }
 0x313   : > { %1259 = vmax.xlane.f32.xlu0 %v1258_v27 }
 0x317   : > { %1253 = vmax.xlane.f32.xlu0 %v1252_v28 }
 0x320   : > { %1960 = vrot.lane.b32.xlu1 %v3913_v43, %s3723_s28 }
 0x32d   : > { %1899 = vrot.lane.b32.xlu0 %v3904_v32, %s3723_s28 }
 0x358   : > { %v1185_v31 = vpop.xlane.xlu1 %1184 }
 0x359   : > { %v1267_v33 = vsub.f32 %v4039_v29, %v1185_v31 }
 0x35a   : > { %v1188_v35 = vpop.xlane.xlu0 %1187 }
 0x35b   : > { %v1305_v38 = vmul.f32 1.442695, %v1267_v33  ;;  %v1268_v14 = vsub.f32 %v4045_v34, %v1188_v35 }
 0x35c   : > { %v1197_v37 = vpop.xlane.xlu1 %1196 }
 0x35d   : > { %3500 = vpow2.f32 %v1305_v38  ;;  %v1307_v39 = vmul.f32 1.442695, %v1268_v14  ;;  %v1271_v48 = vsub.f32 %v4051_v40, %v1197_v37 }
 0x35e   : > { %v1200_v54 = vpop.xlane.xlu0 %1199 }
 0x35f   : > { %3502 = vpow2.f32 %v1307_v39  ;;  %v1313_v56 = vmul.f32 1.442695, %v1271_v48  ;;  %v1272_v43 = vsub.f32 %v4061_v46, %v1200_v54 }
 0x360   : > { %v1179_v60 = vpop.xlane.xlu1 %1178 }
 0x361   : > { %3504 = vpow2.f32 %v1313_v56  ;;  %v1315_v32 = vmul.f32 1.442695, %v1272_v43  ;;  %v1265_v61 = vsub.f32 %v4057_v45, %v1179_v60 }
 0x362   : > { %v1182_v29 = vpop.xlane.xlu0 %1181 }
 0x363   : > { %3506 = vpow2.f32 %v1315_v32  ;;  %v1301_v1 = vmul.f32 1.442695, %v1265_v61  ;;  %v1266_v34 = vsub.f32 %v4067_v50, %v1182_v29 }
 0x364   : > { %v1191_v4 = vpop.xlane.xlu1 %1190 }
 0x365   : > { %3508 = vpow2.f32 %v1301_v1  ;;  %v1303_v15 = vmul.f32 1.442695, %v1266_v34  ;;  %v1269_v40 = vsub.f32 %v4073_v53, %v1191_v4 }
 0x366   : > { %v1194_v18 = vpop.xlane.xlu0 %1193 }
 0x367   : > { %v4248_v27 = vpop.eup %3500  ;;  %3510 = vpow2.f32 %v1303_v15  ;;  %v1309_v46 = vmul.f32 1.442695, %v1269_v40  ;;  %v1270_v28 = vsub.f32 %v4079_v55, %v1194_v18 }
 0x368   : > { %v1209_v31 = vpop.xlane.xlu1 %1208  ;;  %v1375_v45 = vsel %vm417_vm1, %v4248_v27, 0.0 }
 0x369   : > { %v4253_v33 = vpop.eup %3502  ;;  %3512 = vpow2.f32 %v1309_v46  ;;  %v1311_v50 = vmul.f32 1.442695, %v1270_v28  ;;  %v1275_v35 = vsub.f32 %v4087_v59, %v1209_v31  ;;  %1376 = vadd.xlane.f32.xlu1 %v1375_v45 }
 0x36a   : > { %v1212_v38 = vpop.xlane.xlu0 %1211  ;;  %v1378_v53 = vsel %vm417_vm1, %v4253_v33, 0.0 }
 0x36b   : > { %v4258_v14 = vpop.eup %3504  ;;  %3514 = vpow2.f32 %v1311_v50  ;;  %v1321_v37 = vmul.f32 1.442695, %v1275_v35  ;;  %v1276_v55 = vsub.f32 %v4093_v63, %v1212_v38  ;;  %1379 = vadd.xlane.f32.xlu0 %v1378_v53 }
 0x36c   : > { %v1221_v39 = vpop.xlane.xlu1 %1220  ;;  %v1387_v48 = vsel %vm417_vm1, %v4258_v14, 0.0 }
 0x36d   : > { %v4263_v54 = vpop.eup %3506  ;;  %3516 = vpow2.f32 %v1321_v37  ;;  %v1323_v59 = vmul.f32 1.442695, %v1276_v55  ;;  %v1279_v56 = vsub.f32 %v4099_v2, %v1221_v39  ;;  %1388 = vadd.xlane.f32.xlu1 %v1387_v48 }
 0x36e   : > { %v1224_v43 = vpop.xlane.xlu0 %1223  ;;  %v1390_v60 = vsel %vm417_vm1, %v4263_v54, 0.0 }
 0x36f   : > { %v4268_v32 = vpop.eup %3508  ;;  %3518 = vpow2.f32 %v1323_v59  ;;  %v1329_v63 = vmul.f32 1.442695, %v1279_v56  ;;  %v1280_v61 = vsub.f32 %v4109_v49, %v1224_v43  ;;  %1391 = vadd.xlane.f32.xlu0 %v1390_v60 }
 0x370   : > { %v1203_v29 = vpop.xlane.xlu1 %1202  ;;  %v1369_v1 = vsel %vm417_vm1, %v4268_v32, 0.0 }
 0x371   : > { %v4273_v34 = vpop.eup %3510  ;;  %3520 = vpow2.f32 %v1329_v63  ;;  %v1331_v2 = vmul.f32 1.442695, %v1280_v61  ;;  %v1273_v4 = vsub.f32 %v4105_v6, %v1203_v29  ;;  %1370 = vadd.xlane.f32.xlu1 %v1369_v1 }
 0x372   : > { %v1206_v15 = vpop.xlane.xlu0 %1205  ;;  %v1372_v40 = vsel %vm417_vm1, %v4273_v34, 0.0 }
 0x373   : > { %v4278_v18 = vpop.eup %3512  ;;  %3522 = vpow2.f32 %v1331_v2  ;;  %v1317_v49 = vmul.f32 1.442695, %v1273_v4  ;;  %v1274_v46 = vsub.f32 %v4115_v10, %v1206_v15  ;;  %1373 = vadd.xlane.f32.xlu0 %v1372_v40 }
 0x374   : > { %v1215_v28 = vpop.xlane.xlu1 %1214  ;;  %v1381_v31 = vsel %vm417_vm1, %v4278_v18, 0.0 }
 0x375   : > { %v4283_v45 = vpop.eup %3514  ;;  %3524 = vpow2.f32 %v1317_v49  ;;  %v1319_v6 = vmul.f32 1.442695, %v1274_v46  ;;  %v1277_v50 = vsub.f32 %v4123_v17, %v1215_v28  ;;  %1382 = vadd.xlane.f32.xlu1 %v1381_v31 }
 0x376   : > { %v1218_v35 = vpop.xlane.xlu0 %1217  ;;  %v1384_v38 = vsel %vm417_vm1, %v4283_v45, 0.0 }
 0x377   : > { %v4288_v53 = vpop.eup %3516  ;;  %3526 = vpow2.f32 %v1319_v6  ;;  %v1325_v10 = vmul.f32 1.442695, %v1277_v50  ;;  %v1278_v37 = vsub.f32 %v4129_v19, %v1218_v35  ;;  %1385 = vadd.xlane.f32.xlu0 %v1384_v38 }
 0x378   : > { %v1233_v55 = vpop.xlane.xlu1 %1232  ;;  %v1399_v39 = vsel %vm417_vm1, %v4288_v53, 0.0 }
 0x379   : > { %v4293_v48 = vpop.eup %3518  ;;  %3528 = vpow2.f32 %v1325_v10  ;;  %v1327_v17 = vmul.f32 1.442695, %v1278_v37  ;;  %v1283_v59 = vsub.f32 %v4141_v30, %v1233_v55  ;;  %1400 = vadd.xlane.f32.xlu1 %v1399_v39 }
 0x37a   : > { %v1236_v56 = vpop.xlane.xlu0 %1235  ;;  %v1402_v43 = vsel %vm417_vm1, %v4293_v48, 0.0 }
 0x37b   : > { %v4298_v60 = vpop.eup %3520  ;;  %3530 = vpow2.f32 %v1327_v17  ;;  %v1337_v19 = vmul.f32 1.442695, %v1283_v59  ;;  %v1284_v63 = vsub.f32 %v4147_v36, %v1236_v56  ;;  %1403 = vadd.xlane.f32.xlu0 %v1402_v43 }
 0x37c   : > { %v1245_v61 = vpop.xlane.xlu1 %1244  ;;  %v1411_v29 = vsel %vm417_vm1, %v4298_v60, 0.0 }
 0x37d   : > { %v4303_v1 = vpop.eup %3522  ;;  %3532 = vpow2.f32 %v1337_v19  ;;  %v1339_v30 = vmul.f32 1.442695, %v1284_v63  ;;  %v1287_v2 = vsub.f32 %v4155_v47, %v1245_v61  ;;  %1412 = vadd.xlane.f32.xlu1 %v1411_v29 }
 0x37e   : > { %v1248_v4 = vpop.xlane.xlu0 %1247  ;;  %v1414_v15 = vsel %vm417_vm1, %v4303_v1, 0.0 }
 0x37f   : > { %v4308_v40 = vpop.eup %3524  ;;  %3534 = vpow2.f32 %v1339_v30  ;;  %v1345_v36 = vmul.f32 1.442695, %v1287_v2  ;;  %v1288_v49 = vsub.f32 %v4167_v58, %v1248_v4  ;;  %1415 = vadd.xlane.f32.xlu0 %v1414_v15 }
 0x380   : > { %v1227_v46 = vpop.xlane.xlu1 %1226  ;;  %v1393_v28 = vsel %vm417_vm1, %v4308_v40, 0.0 }
 0x381   : > { %v4313_v31 = vpop.eup %3526  ;;  %3536 = vpow2.f32 %v1345_v36  ;;  %v1347_v47 = vmul.f32 1.442695, %v1288_v49  ;;  %v1281_v6 = vsub.f32 %v4163_v57, %v1227_v46  ;;  %1394 = vadd.xlane.f32.xlu1 %v1393_v28 }
 0x382   : > { %v1230_v50 = vpop.xlane.xlu0 %1229  ;;  %v1396_v35 = vsel %vm417_vm1, %v4313_v31, 0.0 }
 0x383   : > { %v4318_v38 = vpop.eup %3528  ;;  %3538 = vpow2.f32 %v1347_v47  ;;  %v1333_v58 = vmul.f32 1.442695, %v1281_v6  ;;  %v1282_v10 = vsub.f32 %v4173_v62, %v1230_v50  ;;  %1397 = vadd.xlane.f32.xlu0 %v1396_v35 }
 0x384   : > { %v1239_v37 = vpop.xlane.xlu1 %1238  ;;  %v1405_v55 = vsel %vm417_vm1, %v4318_v38, 0.0 }
 0x385   : > { %v4323_v39 = vpop.eup %3530  ;;  %3540 = vpow2.f32 %v1333_v58  ;;  %v1335_v57 = vmul.f32 1.442695, %v1282_v10  ;;  %v1285_v17 = vsub.f32 %v4181_v3, %v1239_v37  ;;  %1406 = vadd.xlane.f32.xlu1 %v1405_v55 }
 0x386   : > { %v1242_v59 = vpop.xlane.xlu0 %1241  ;;  %v1408_v56 = vsel %vm417_vm1, %v4323_v39, 0.0 }
 0x387   : > { %v4328_v43 = vpop.eup %3532  ;;  %3542 = vpow2.f32 %v1335_v57  ;;  %v1341_v62 = vmul.f32 1.442695, %v1285_v17  ;;  %v1286_v19 = vsub.f32 %v4188_v7, %v1242_v59  ;;  %1409 = vadd.xlane.f32.xlu0 %v1408_v56 }
 0x388   : > { %v1423_v63 = vsel %vm417_vm1, %v4328_v43, 0.0 }
 0x389   : > { %v4333_v61 = vpop.eup %3534  ;;  %3544 = vpow2.f32 %v1341_v62  ;;  %v1343_v29 = vmul.f32 1.442695, %v1286_v19  ;;  %1424 = vadd.xlane.f32.xlu1 %v1423_v63 }
 0x38a   : > { %v1426_v3 = vsel %vm417_vm1, %v4333_v61, 0.0 }
 0x38b   : > { %v4337_v30 = vpop.eup %3536  ;;  %3546 = vpow2.f32 %v1343_v29  ;;  %1427 = vadd.xlane.f32.xlu0 %v1426_v3 }
 0x38c   : > { %v1435_v2 = vsel %vm417_vm1, %v4337_v30, 0.0 }
 0x38d   : > { %v4341_v7 = vpop.eup %3538  ;;  %1436 = vadd.xlane.f32.xlu1 %v1435_v2 }
 0x38e   : > { %v1438_v4 = vsel %vm417_vm1, %v4341_v7, 0.0 }
 0x38f   : > { %v4345_v15 = vpop.eup %3540  ;;  %1439 = vadd.xlane.f32.xlu0 %v1438_v4 }
 0x390   : > { %v1365_v36 = vpop.xlane.xlu1 %1364  ;;  %v1417_v49 = vsel %vm417_vm1, %v4345_v15, 0.0 }
 0x391   : > { %v4349_v46 = vpop.eup %3542  ;;  %1418 = vadd.xlane.f32.xlu1 %v1417_v49  ;;  %3548 = vrcp.f32 %v1365_v36 }
 0x392   : > { %v1420_v28 = vsel %vm417_vm1, %v4349_v46, 0.0 }
 0x393   : > { %v4353_v47 = vpop.eup %3544  ;;  %1421 = vadd.xlane.f32.xlu0 %v1420_v28 }
 0x394   : > { %v1359_v6 = vpop.xlane.xlu1 %1358  ;;  %v1429_v50 = vsel %vm417_vm1, %v4353_v47, 0.0 }
 0x395   : > { %v4357_v35 = vpop.eup %3546  ;;  %1430 = vadd.xlane.f32.xlu1 %v1429_v50 }
 0x396   : > { %v1432_v58 = vsel %vm417_vm1, %v4357_v35, 0.0 }
 0x397   : > { %1433 = vadd.xlane.f32.xlu0 %v1432_v58 }
 0x398   : > { %v1368_v10 = vpop.xlane.xlu0 %1367  ;;  %v1257_v37 = vpop.xlane.xlu1 %1256 }
 0x399   : > { %v1291_v55 = vsub.f32 %v4207_v51, %v1257_v37  ;;  %3550 = vrcp.f32 %v1368_v10 }
 0x39a   : > { %3552 = vrcp.f32 %v1359_v6 }
 0x39b   : > { %v1353_v57 = vmul.f32 1.442695, %v1291_v55  ;;  %v3549_v3 = vpop.eup %3548 }
 0x39c   : > { %v1362_v17 = vpop.xlane.xlu0 %1361  ;;  %v1251_v59 = vpop.xlane.xlu1 %1250  ;;  %v1487_v10 = vmul.f32 %v3549_v3, %v4197_v20 }
 0x39d   : > { %3554 = vpow2.f32 %v1353_v57  ;;  %v1289_v56 = vsub.f32 %v4219_v9, %v1251_v59 }
 0x39e   : > { %3556 = vrcp.f32 %v1362_v17 }
 0x39f   : > { %v1349_v62 = vmul.f32 1.442695, %v1289_v56 }
 0x3a0   : > { %v1260_v19 = vpop.xlane.xlu0 %1259 }
 0x3a1   : > { %3558 = vpow2.f32 %v1349_v62  ;;  %v1292_v63 = vsub.f32 %v4227_v22, %v1260_v19 }
 0x3a3   : > { %v1355_v29 = vmul.f32 1.442695, %v1292_v63  ;;  %v3551_v4 = vpop.eup %3550 }
 0x3a4   : > { %v1254_v2 = vpop.xlane.xlu0 %1253  ;;  %v3553_v36 = vpop.eup %3552  ;;  %v1488_v9 = vmul.f32 %v3551_v4, %v4209_v26 }
 0x3a5   : > { %3560 = vpow2.f32 %v1355_v29  ;;  %v1290_v51 = vsub.f32 %v4233_v16, %v1254_v2  ;;  %v1485_v22 = vmul.f32 %v3553_v36, %v4201_v23 }
 0x3a6   : > { %v1518_v55 = vpack.c.bf16 %v1488_v9, %v1487_v10 }
 0x3a7   : > { %v4365_v49 = vpop.eup %3554  ;;  %v1351_v28 = vmul.f32 1.442695, %v1290_v51 }
 0x3a8   : > { %v3557_v6 = vpop.eup %3556  ;;  %v1447_v50 = vsel %vm417_vm1, %v4365_v49, 0.0  ;;  %v4397_v17 = vpop.permute.xlu0 %1899 }
 0x3a9   : > { %3562 = vpow2.f32 %v1351_v28  ;;  %1448 = vadd.xlane.f32.xlu1 %v1447_v50  ;;  %v1486_v58 = vmul.f32 %v3557_v6, %v4215_v5 }
 0x3ab   : > { %v4373_v37 = vpop.eup %3558  ;;  %v1517_v16 = vpack.c.bf16 %v1486_v58, %v1485_v22 }
 0x3ac   : > { %v1441_v57 = vsel %vm417_vm1, %v4373_v37, 0.0 }
 0x3ad   : > { %3194 = vmatprep.mubr.msk.bf16.mxu1 %vm417_vm1, %v1517_v16  ;;  %1442 = vadd.xlane.f32.xlu1 %v1441_v57 }
 0x3ae   : > { %3195 = vmatmul.mubr.msk.bf16.vlgmr.msra.gmra.mrb[12].mxu1 %vm417_vm1, %v1518_v55 }
 0x3af   : > { %v4379_v26 = vpop.eup %3560  ;;  %3207 = vmatpush3.bf16.msra.mxu1 %v4001_v11  ;;  %v4395_v11 = vpop.permute.xlu1 %1960 }
 0x3b0   : > { %3208 = vmatprep.subr.bf16.mxu1 %v4117_v12  ;;  %v1450_v20 = vsel %vm417_vm1, %v4379_v26, 0.0 }
 0x3b1   : > { %1451 = vadd.xlane.f32.xlu0 %v1450_v20 }
 0x3b3   : > { %v4385_v23 = vpop.eup %3562  ;;  %3209 = vmatpush3.bf16.msra.mxu1 %v4117_v12 }
 0x3b4   : > { %3222 = vmatprep.subr.bf16.mxu1 %v4135_v25  ;;  %v1444_v5 = vsel %vm417_vm1, %v4385_v23, 0.0 }
 0x3b5   : > { %1445 = vadd.xlane.f32.xlu0 %v1444_v5 }
 0x3be   : > { %1962 = vrot.lane.b32.xlu1 %v3919_v44, %s3723_s28 }
 0x3cb   : > { %1901 = vrot.lane.b32.xlu0 %v3911_v42, %s3723_s28 }
 0x3f6   : > { %v1377_v59 = vpop.xlane.xlu1 %1376 }
 0x3f8   : > { %v1380_v56 = vpop.xlane.xlu0 %1379 }
 0x3f9   : > { %3564 = vrcp.f32 %v1380_v56 }
 0x3fa   : > { %v1389_v62 = vpop.xlane.xlu1 %1388 }
 0x3fc   : > { %v1392_v12 = vpop.xlane.xlu0 %1391 }
 0x3fe   : > { %v1371_v19 = vpop.xlane.xlu1 %1370 }
 0x3ff   : > { %3566 = vrcp.f32 %v1371_v19 }
 0x400   : > { %3568 = vrcp.f32 %v1377_v59  ;;  %v1374_v63 = vpop.xlane.xlu0 %1373 }
 0x401   : > { %3570 = vrcp.f32 %v1374_v63 }
 0x402   : > { %3572 = vrcp.f32 %v1392_v12  ;;  %v1383_v29 = vpop.xlane.xlu1 %1382 }
 0x403   : > { %3574 = vrcp.f32 %v1383_v29  ;;  %v3565_v3 = vpop.eup %3564 }
 0x404   : > { %3576 = vrcp.f32 %v1389_v62  ;;  %v1386_v44 = vpop.xlane.xlu0 %1385  ;;  %v1492_v6 = vmul.f32 %v3565_v3, %v4253_v33 }
 0x405   : > { %3578 = vrcp.f32 %v1386_v44 }
 0x406   : > { %v1401_v42 = vpop.xlane.xlu1 %1400 }
 0x408   : > { %v1404_v2 = vpop.xlane.xlu0 %1403 }
 0x409   : > { %v3567_v4 = vpop.eup %3566  ;;  %3580 = vrcp.f32 %v1404_v2 }
 0x40a   : > { %v3569_v51 = vpop.eup %3568  ;;  %v1413_v36 = vpop.xlane.xlu1 %1412  ;;  %v1489_v22 = vmul.f32 %v3567_v4, %v4268_v32 }
 0x40b   : > { %v3571_v28 = vpop.eup %3570  ;;  %v1491_v16 = vmul.f32 %v3569_v51, %v4248_v27 }
 0x40c   : > { %v3573_v9 = vpop.eup %3572  ;;  %v1416_v50 = vpop.xlane.xlu0 %1415  ;;  %v1490_v58 = vmul.f32 %v3571_v28, %v4273_v34 }
 0x40d   : > { %v3575_v10 = vpop.eup %3574  ;;  %v1496_v59 = vmul.f32 %v3573_v9, %v4263_v54  ;;  %v1520_v56 = vpack.c.bf16 %v1492_v6, %v1491_v16 }
 0x40e   : > { %v3577_v55 = vpop.eup %3576  ;;  %v1395_v57 = vpop.xlane.xlu1 %1394  ;;  %v1519_v20 = vpack.c.bf16 %v1490_v58, %v1489_v22  ;;  %v1493_v32 = vmul.f32 %v3575_v10, %v4278_v18 }
 0x40f   : > { %v3579_v5 = vpop.eup %3578  ;;  %3582 = vrcp.f32 %v1395_v57  ;;  %v1495_v62 = vmul.f32 %v3577_v55, %v4258_v14 }
 0x410   : > { %3584 = vrcp.f32 %v1401_v42  ;;  %3202 = vmatprep.mubr.msk.bf16.mxu0 %vm417_vm1, %v1519_v20  ;;  %v1398_v33 = vpop.xlane.xlu0 %1397  ;;  %v1494_v34 = vmul.f32 %v3579_v5, %v4283_v45 }
 0x411   : > { %3586 = vrcp.f32 %v1398_v33  ;;  %3203 = vmatmul.mubr.msk.bf16.vlgmr.msra.gmra.mrb[28].mxu0 %vm417_vm1, %v1520_v56  ;;  %v1522_v12 = vpack.c.bf16 %v1496_v59, %v1495_v62 }
 0x412   : > { %3588 = vrcp.f32 %v1416_v50  ;;  %3215 = vmatpush3.bf16.msra.mxu0 %v4006_v13  ;;  %v1407_v27 = vpop.xlane.xlu1 %1406  ;;  %v1521_v54 = vpack.c.bf16 %v1494_v34, %v1493_v32 }
 0x413   : > { %3590 = vrcp.f32 %v1407_v27  ;;  %3216 = vmatprep.subr.bf16.mxu0 %v4131_v21  ;;  %v3581_v13 = vpop.eup %3580 }
 0x414   : > { %3592 = vrcp.f32 %v1413_v36  ;;  %3210 = vmatprep.mubr.msk.bf16.mxu1 %vm417_vm1, %v1521_v54  ;;  %v1410_v18 = vpop.xlane.xlu0 %1409  ;;  %v1500_v42 = vmul.f32 %v3581_v13, %v4293_v48 }
 0x415   : > { %3594 = vrcp.f32 %v1410_v18  ;;  %3211 = vmatmul.mubr.msk.bf16.vlgmr.msra.gmra.mrb[16].mxu1 %vm417_vm1, %v1522_v12 }
 0x416   : > { %3217 = vmatpush3.bf16.msra.mxu0 %v4131_v21  ;;  %3223 = vmatpush3.bf16.msra.mxu1 %v4135_v25  ;;  %v1425_v14 = vpop.xlane.xlu1 %1424 }
 0x417   : > { %3224 = vmatprep.subr.bf16.mxu1 %v4157_v52  ;;  %3230 = vmatprep.subr.bf16.mxu0 %v4175_v0 }
 0x418   : > { %v1428_v45 = vpop.xlane.xlu0 %1427 }
 0x419   : > { %v3583_v19 = vpop.eup %3582  ;;  %3596 = vrcp.f32 %v1428_v45 }
 0x41a   : > { %v3585_v63 = vpop.eup %3584  ;;  %3225 = vmatpush3.bf16.msra.mxu1 %v4157_v52  ;;  %v1437_v29 = vpop.xlane.xlu1 %1436  ;;  %v1497_v25 = vmul.f32 %v3583_v19, %v4308_v40 }
 0x41b   : > { %v3587_v44 = vpop.eup %3586  ;;  %3238 = vmatprep.subr.bf16.mxu1 %v4397_v17  ;;  %v1499_v51 = vmul.f32 %v3585_v63, %v4288_v53 }
 0x41c   : > { %v3589_v21 = vpop.eup %3588  ;;  %v1440_v3 = vpop.xlane.xlu0 %1439  ;;  %v1498_v2 = vmul.f32 %v3587_v44, %v4313_v31 }
 0x41d   : > { %v3591_v4 = vpop.eup %3590  ;;  %v1504_v9 = vmul.f32 %v3589_v21, %v4303_v1  ;;  %v1524_v48 = vpack.c.bf16 %v1500_v42, %v1499_v51 }
 0x41e   : > { %v3593_v36 = vpop.eup %3592  ;;  %v1419_v28 = vpop.xlane.xlu1 %1418  ;;  %v1523_v6 = vpack.c.bf16 %v1498_v2, %v1497_v25  ;;  %v1501_v40 = vmul.f32 %v3591_v4, %v4318_v38 }
 0x41f   : > { %v3595_v52 = vpop.eup %3594  ;;  %3598 = vrcp.f32 %v1419_v28  ;;  %v1503_v22 = vmul.f32 %v3593_v36, %v4298_v60 }
 0x420   : > { %3600 = vrcp.f32 %v1425_v14  ;;  %3218 = vmatprep.mubr.msk.bf16.mxu0 %vm417_vm1, %v1523_v6  ;;  %v1422_v50 = vpop.xlane.xlu0 %1421  ;;  %v1502_v31 = vmul.f32 %v3595_v52, %v4323_v39 }
 0x421   : > { %3602 = vrcp.f32 %v1422_v50  ;;  %3219 = vmatmul.mubr.msk.bf16.vlgmr.msra.gmra.mrb[32].mxu0 %vm417_vm1, %v1524_v48  ;;  %v1526_v1 = vpack.c.bf16 %v1504_v9, %v1503_v22  ;;  %v3480_v9 = vld [vmem:[%s3793_s10] sm:$0xff]   ;;  %v3481_v48 = vld [vmem:[%s3793_s10 + $0x8] sm:$0xff]  }
 0x422   : > { %3231 = vmatpush3.bf16.msra.mxu0 %v4175_v0  ;;  %v1431_v53 = vpop.xlane.xlu1 %1430  ;;  %v1525_v58 = vpack.c.bf16 %v1502_v31, %v1501_v40 }
 0x423   : > { %3604 = vrcp.f32 %v1431_v53  ;;  %3232 = vmatprep.subr.bf16.mxu0 %v4149_v41  ;;  %v3597_v60 = vpop.eup %3596 }
 0x424   : > { %3226 = vmatprep.mubr.msk.bf16.mxu1 %vm417_vm1, %v1525_v58  ;;  %v1434_v10 = vpop.xlane.xlu0 %1433  ;;  %v1508_v16 = vmul.f32 %v3597_v60, %v4333_v61 }
 0x425   : > { %3606 = vrcp.f32 %v1434_v10  ;;  %3227 = vmatmul.mubr.msk.bf16.vlgmr.msra.gmra.mrb[20].mxu1 %vm417_vm1, %v1526_v1 }
 0x426   : > { %3233 = vmatpush3.bf16.msra.mxu0 %v4149_v41  ;;  %3239 = vmatpush3.bf16.msra.mxu1 %v4397_v17  ;;  %3608 = vrcp.f32 %v1440_v3 }
 0x427   : > { %3246 = vmatprep.subr.bf16.mxu0 %v4395_v11  ;;  %3610 = vrcp.f32 %v1437_v29 }
 0x429   : > { %v3599_v0 = vpop.eup %3598 }
 0x42a   : > { %v3601_v38 = vpop.eup %3600  ;;  %v1505_v55 = vmul.f32 %v3599_v0, %v4345_v15 }
 0x42b   : > { %v3603_v39 = vpop.eup %3602  ;;  %v1507_v5 = vmul.f32 %v3601_v38, %v4328_v43 }
 0x42c   : > { %v1506_v57 = vmul.f32 %v3603_v39, %v4349_v46 }
 0x42d   : > { %v3605_v20 = vpop.eup %3604  ;;  %v1528_v41 = vpack.c.bf16 %v1508_v16, %v1507_v5 }
 0x42e   : > { %v1527_v59 = vpack.c.bf16 %v1506_v57, %v1505_v55  ;;  %v1509_v17 = vmul.f32 %v3605_v20, %v4353_v47 }
 0x42f   : > { %v3607_v56 = vpop.eup %3606 }
 0x430   : > { %3234 = vmatprep.mubr.msk.bf16.mxu0 %vm417_vm1, %v1527_v59  ;;  %v1510_v33 = vmul.f32 %v3607_v56, %v4357_v35  ;;  %v3609_v47 = vpop.eup %3608 }
 0x431   : > { %3235 = vmatmul.mubr.msk.bf16.vlgmr.msra.gmra.mrb[36].mxu0 %vm417_vm1, %v1528_v41  ;;  %v3611_v34 = vpop.eup %3610 }
 0x432   : > { %3247 = vmatpush3.bf16.msra.mxu0 %v4395_v11  ;;  %v1529_v61 = vpack.c.bf16 %v1510_v33, %v1509_v17  ;;  %v1512_v11 = vmul.f32 %v3609_v47, %v4341_v7  ;;  %v1511_v27 = vmul.f32 %v3611_v34, %v4337_v30 }
 0x434   : > { %3242 = vmatprep.mubr.msk.bf16.mxu1 %vm417_vm1, %v1529_v61  ;;  %v1530_v54 = vpack.c.bf16 %v1512_v11, %v1511_v27 }
 0x436   : > { %v1449_v15 = vpop.xlane.xlu1 %1448 }
 0x43a   : > { %v1443_v43 = vpop.xlane.xlu1 %1442 }
 0x43e   : > { %v1963_v46 = vpop.permute.xlu1 %1962  ;;  %v1452_v32 = vpop.xlane.xlu0 %1451 }
 0x43f   : > { %3248 = vmatprep.subr.bf16.mxu0 %v1963_v46  ;;  %3612 = vrcp.f32 %v1452_v32 }
 0x440   : > { %3249 = vmatpush3.bf16.msra.mxu0 %v1963_v46  ;;  %3614 = vrcp.f32 %v1443_v43 }
 0x441   : > { %3616 = vrcp.f32 %v1449_v15 }
 0x442   : > { %v1446_v35 = vpop.xlane.xlu0 %1445 }
 0x443   : > { %3618 = vrcp.f32 %v1446_v35 }
 0x446   : > { %v1902_v62 = vpop.permute.xlu0 %1901 }
 0x447   : > { %3240 = vmatprep.subr.bf16.mxu1 %v1902_v62 }
 0x448   : > { %3241 = vmatpush3.bf16.msra.mxu1 %v1902_v62 }
 0x449   : > { %v3613_v12 = vpop.eup %3612  ;;  %3254 = vmatprep.subr.bf16.mxu1 %v3480_v9 }
 0x44a   : > { %v3615_v18 = vpop.eup %3614  ;;  %v1516_v45 = vmul.f32 %v3613_v12, %v4379_v26 }
 0x44b   : > { %3243 = vmatmul.mubr.msk.bf16.vlgmr.msra.gmra.mrb[24].mxu1 %vm417_vm1, %v1530_v54  ;;  %v3617_v14 = vpop.eup %3616  ;;  %v1513_v19 = vmul.f32 %v3615_v18, %v4373_v37 }
 0x44c   : > { %v1515_v7 = vmul.f32 %v3617_v14, %v4365_v49  ;;  %3255 = vmatpush3.bf16.msra.mxu1 %v3480_v9 }
 0x44d   : > { %v3619_v13 = vpop.eup %3618  ;;  %3256 = vmatprep.subr.bf16.mxu1 %v3481_v48 }
 0x44e   : > { %v1514_v63 = vmul.f32 %v3619_v13, %v4385_v23  ;;  %v1532_v44 = vpack.c.bf16 %v1516_v45, %v1515_v7 }
 0x450   : > { %v1531_v29 = vpack.c.bf16 %v1514_v63, %v1513_v19  ;;  %3257 = vmatpush3.bf16.msra.mxu1 %v3481_v48 }
 0x452   : > { %3250 = vmatprep.mubr.msk.bf16.mxu0 %vm417_vm1, %v1531_v29 }
 0x453   : > { %3251 = vmatmul.mubr.msk.bf16.vlgmr.msra.gmra.mrb[40].mxu0 %vm417_vm1, %v1532_v44 }
 0x481   : > { %v4455_v30 = vpop.f32.mrb[12].mxu1 }
 0x482   : > { %v4457_v42 = vpop.f32.mrb[13].mxu1 }
 0x483   : > { %v4459_v21 = vpop.f32.mrb[14].mxu1 }
 0x484   : > { %v4461_v3 = vpop.f32.mrb[15].mxu1 }
 0x4e4   : > { %v3204_v37 = vpop.f32.mrb[28].mxu0 }
 0x4e5   : > { %v1640_v26 = vpop.f32.mrb[29].mxu0 }
 0x4e6   : > { %v3205_v23 = vpop.f32.mrb[30].mxu0 }
 0x4e7   : > { %v3418_v25 = vpack.i.bf16 %v3205_v23, %v3204_v37  ;;  %v1643_v49 = vpop.f32.mrb[31].mxu0 }
 0x4e8   : > { %v3428_v2 = vpack.i.bf16 %v1643_v49, %v1640_v26  ;;  %v3212_v4 = vpop.f32.mrb[16].mxu1 }
 0x4e9   : > { %3419 = vrot.lane.b32.xlu1 %v3418_v25, %s3724_s27  ;;  %v1701_v51 = vpop.f32.mrb[17].mxu1 }
 0x4ea   : > { %3429 = vrot.lane.b32.xlu0 %v3428_v2, %s3724_s27  ;;  %v3213_v36 = vpop.f32.mrb[18].mxu1 }
 0x4eb   : > { %v3423_v28 = vpack.i.bf16 %v3213_v36, %v3212_v4  ;;  %v1704_v6 = vpop.f32.mrb[19].mxu1 }
 0x4ec   : > { %v3433_v52 = vpack.i.bf16 %v1704_v6, %v1701_v51 }
 0x4ed   : > { %3424 = vrot.lane.b32.xlu1 %v3423_v28, %s3725_s9 }
 0x4ee   : > { %3434 = vrot.lane.b32.xlu0 %v3433_v52, %s3725_s9 }
 0x4f4   : > { %v3220_v50 = vpop.f32.mrb[32].mxu0 }
 0x4f5   : > { %v1762_v40 = vpop.f32.mrb[33].mxu0 }
 0x4f6   : > { %v3221_v31 = vpop.f32.mrb[34].mxu0 }
 0x4f7   : > { %v3438_v22 = vpack.i.bf16 %v3221_v31, %v3220_v50  ;;  %v1765_v53 = vpop.f32.mrb[35].mxu0 }
 0x4f8   : > { %v3443_v58 = vpack.i.bf16 %v1765_v53, %v1762_v40  ;;  %v4469_v1 = vpop.f32.mrb[20].mxu1 }
 0x4f9   : > { %3439 = vrot.lane.b32.xlu1 %v3438_v22, %s3726_s11  ;;  %v4471_v10 = vpop.f32.mrb[21].mxu1 }
 0x4fa   : > { %3444 = vrot.lane.b32.xlu0 %v3443_v58, %s3726_s11  ;;  %v4473_v60 = vpop.f32.mrb[22].mxu1 }
 0x4fb   : > { %v4475_v0 = vpop.f32.mrb[23].mxu1 }
 0x504   : > { %v3236_v38 = vpop.f32.mrb[36].mxu0 }
 0x505   : > { %v1884_v39 = vpop.f32.mrb[37].mxu0 }
 0x506   : > { %v3237_v16 = vpop.f32.mrb[38].mxu0 }
 0x507   : > { %v3448_v55 = vpack.i.bf16 %v3237_v16, %v3236_v38  ;;  %v1887_v57 = vpop.f32.mrb[39].mxu0 }
 0x508   : > { %v3458_v20 = vpack.i.bf16 %v1887_v57, %v1884_v39 }
 0x509   : > { %3449 = vrot.lane.b32.xlu1 %v3448_v55, %s3724_s27 }
 0x50a   : > { %3459 = vrot.lane.b32.xlu0 %v3458_v20, %s3724_s27 }
 0x51e   : > { %v3244_v5 = vpop.f32.mrb[24].mxu1 }
 0x51f   : > { %v1945_v59 = vpop.f32.mrb[25].mxu1 }
 0x520   : > { %v3245_v56 = vpop.f32.mrb[26].mxu1 }
 0x521   : > { %v3453_v41 = vpack.i.bf16 %v3245_v56, %v3244_v5  ;;  %v1948_v17 = vpop.f32.mrb[27].mxu1 }
 0x522   : > { %v3463_v33 = vpack.i.bf16 %v1948_v17, %v1945_v59 }
 0x523   : > { %3454 = vrot.lane.b32.xlu1 %v3453_v41, %s3725_s9 }
 0x524   : > { %3464 = vrot.lane.b32.xlu0 %v3463_v33, %s3725_s9 }
 0x526   : > { %v3252_v61 = vpop.f32.mrb[40].mxu0 }
 0x527   : > { %v2006_v15 = vpop.f32.mrb[41].mxu0 }
 0x528   : > { %v3253_v43 = vpop.f32.mrb[42].mxu0 }
 0x529   : > { %v3473_v46 = vpack.i.bf16 %v3253_v43, %v3252_v61  ;;  %v2009_v32 = vpop.f32.mrb[43].mxu0 }
 0x52a   : > { %v3468_v47 = vpack.i.bf16 %v2009_v32, %v2006_v15 }
 0x52b   : > { %3474 = vrot.lane.b32.xlu1 %v3473_v46, %s3726_s11 }
 0x52c   : > { %3469 = vrot.lane.b32.xlu0 %v3468_v47, %s3726_s11 }
 0x55b   : > { %v3420_v35 = vpop.permute.xlu1 %3419 }
 0x55c   : > { %v3430_v34 = vpop.permute.xlu0 %3429  ;;  %v3422_v62 = vunpack.i.h.bf16 %v3420_v35  ;;  %v3421_v27 = vunpack.i.l.bf16 %v3420_v35 }
 0x55d   : > { %v3432_v12 = vunpack.i.h.bf16 %v3430_v34  ;;  %v3431_v18 = vunpack.i.l.bf16 %v3430_v34 }
 0x55e   : > { %v2120_v63 = vsel %vm597_vm2, %v4459_v21, %v3422_v62  ;;  %v2119_v7 = vsel %vm597_vm2, %v4455_v30, %v3421_v27  ;;  %v4519_v62 = vld [vmem:[%s3808_s19] sm:$0xff] }
 0x55f   : > { %v3425_v11 = vpop.permute.xlu1 %3424  ;;  %v2118_v44 = vsel %vm597_vm2, %v4461_v3, %v3432_v12  ;;  %v2117_v37 = vsel %vm597_vm2, %v4457_v42, %v3431_v18 }
 0x560   : > { %v3435_v54 = vpop.permute.xlu0 %3434  ;;  %v3427_v14 = vunpack.i.h.bf16 %v3425_v11  ;;  %v3426_v13 = vunpack.i.l.bf16 %v3425_v11  ;;  %v2153_v11 = vsub.s32 1, %v3843_v24 }
 0x561   : > { %v3437_v45 = vunpack.i.h.bf16 %v3435_v54  ;;  %v3436_v19 = vunpack.i.l.bf16 %v3435_v54 }
 0x562   : > { %v2129_v49 = vsel %vm2125_vm4, %v2120_v63, %v3427_v14  ;;  %v2128_v2 = vsel %vm2125_vm4, %v2119_v7, %v3426_v13  ;;  %v2154_v27 = vrot.slane %v4519_v62, %v2153_v11 }
 0x563   : > { %v2126_v51 = vsel %vm2125_vm4, %v2117_v37, %v3436_v19  ;;  %v2127_v30 = vsel %vm2125_vm4, %v2118_v44, %v3437_v45  ;;  %v3653_v19 = vld [vmem:[#allocation2] sm:$0xff] }
 0x56b   : > { %v3440_v29 = vpop.permute.xlu1 %3439 }
 0x56c   : > { %v3442_v26 = vunpack.i.h.bf16 %v3440_v29  ;;  %v3441_v23 = vunpack.i.l.bf16 %v3440_v29  ;;  %v3445_v25 = vpop.permute.xlu0 %3444  ;;  %v3654_v29 = vld [vmem:[#allocation2 + $0x10] sm:$0xff] }
 0x56d   : > { %v3447_v4 = vunpack.i.h.bf16 %v3445_v25  ;;  %v3446_v21 = vunpack.i.l.bf16 %v3445_v25 }
 0x56e   : > { %v2138_v36 = vsel %vm2134_vm5, %v2129_v49, %v3442_v26  ;;  %v2137_v3 = vsel %vm2134_vm5, %v2128_v2, %v3441_v23  ;;  %v3655_v26 = vld [vmem:[#allocation2 + $0x8] sm:$0xff]  ;;  %v3656_v2 = vld [vmem:[#allocation2 + $0x18] sm:$0xff] }
 0x56f   : > { %v2144_v28 = vpack.c.bf16 %v2138_v36, %v2137_v3  ;;  %v2135_v42 = vsel %vm2134_vm5, %v2126_v51, %v3446_v21  ;;  %v2136_v6 = vsel %vm2134_vm5, %v2127_v30, %v3447_v4 }
 0x570   : > { %v2143_v52 = vpack.c.bf16 %v2136_v6, %v2135_v42 }
 0x572   : > { %3258 = vmatprep.mubr.msk.bf16.mxu1 %vm417_vm1, %v2143_v52  ;;  %v3657_v52 = vld [vmem:[#allocation2 + $0x20] sm:$0xff] }
 0x573   : > { %3259 = vmatmul.mubr.msk.bf16.vlgmr.msra.gmra.mrb[28].mxu1 %vm417_vm1, %v2144_v28 }
 0x57b   : > { %v3450_v9 = vpop.permute.xlu1 %3449 }
 0x57c   : > { %v3460_v48 = vpop.permute.xlu0 %3459  ;;  %v3452_v40 = vunpack.i.h.bf16 %v3450_v9  ;;  %v3451_v31 = vunpack.i.l.bf16 %v3450_v9 }
 0x57d   : > { %v3462_v53 = vunpack.i.h.bf16 %v3460_v48  ;;  %v3461_v58 = vunpack.i.l.bf16 %v3460_v48 }
 0x57e   : > { %v2124_v57 = vsel %vm597_vm2, %v4473_v60, %v3452_v40  ;;  %v2123_v20 = vsel %vm597_vm2, %v4469_v1, %v3451_v31  ;;  %v3658_v40 = vld [vmem:[#allocation2 + $0x30] sm:$0xff] }
 0x57f   : > { %v2122_v59 = vsel %vm597_vm2, %v4475_v0, %v3462_v53  ;;  %v2121_v56 = vsel %vm597_vm2, %v4471_v10, %v3461_v58 }
 0x595   : > { %v3455_v50 = vpop.permute.xlu1 %3454 }
 0x596   : > { %v3465_v22 = vpop.permute.xlu0 %3464  ;;  %v3457_v38 = vunpack.i.h.bf16 %v3455_v50  ;;  %v3456_v39 = vunpack.i.l.bf16 %v3455_v50 }
 0x597   : > { %v3467_v16 = vunpack.i.h.bf16 %v3465_v22  ;;  %v3466_v55 = vunpack.i.l.bf16 %v3465_v22  ;;  %v3659_v22 = vld [vmem:[#allocation2 + $0x28] sm:$0xff] }
 0x598   : > { %v2133_v61 = vsel %vm2125_vm4, %v2124_v57, %v3457_v38  ;;  %v2132_v15 = vsel %vm2125_vm4, %v2123_v20, %v3456_v39  ;;  %v3660_v38 = vld [vmem:[#allocation2 + $0x38] sm:$0xff] }
 0x599   : > { %v2130_v46 = vsel %vm2125_vm4, %v2121_v56, %v3466_v55  ;;  %v2131_v1 = vsel %vm2125_vm4, %v2122_v59, %v3467_v16 }
 0x59d   : > { %v3475_v5 = vpop.permute.xlu1 %3474 }
 0x59e   : > { %v3477_v41 = vunpack.i.h.bf16 %v3475_v5  ;;  %v3476_v17 = vunpack.i.l.bf16 %v3475_v5  ;;  %v3470_v33 = vpop.permute.xlu0 %3469 }
 0x59f   : > { %v3472_v43 = vunpack.i.h.bf16 %v3470_v33  ;;  %v3471_v60 = vunpack.i.l.bf16 %v3470_v33 }
 0x5a0   : > { %v2141_v32 = vsel %vm2134_vm5, %v2132_v15, %v3476_v17  ;;  %v2142_v0 = vsel %vm2134_vm5, %v2133_v61, %v3477_v41 }
 0x5a1   : > { %v2146_v47 = vpack.c.bf16 %v2142_v0, %v2141_v32  ;;  %v2139_v10 = vsel %vm2134_vm5, %v2130_v46, %v3471_v60  ;;  %v2140_v35 = vsel %vm2134_vm5, %v2131_v1, %v3472_v43 }
 0x5a2   : > { %v2145_v34 = vpack.c.bf16 %v2140_v35, %v2139_v10 }
 0x5a4   : > { %3262 = vmatprep.mubr.msk.bf16.mxu1 %vm417_vm1, %v2145_v34 }
 0x5a5   : > { %3263 = vmatmul.mubr.msk.bf16.gmra.mrb[32].mxu1 %vm417_vm1, %v2146_v47 }
 0x646   : > { %v3260_v54 = vpop.f32.mrb[28].mxu1 }
 0x647   : > { %v2213_v12 = vpop.f32.mrb[29].mxu1  ;;  %v2222_v18 = vadd.f32 %v3260_v54, %v2154_v27  ;;  %v3483_v54 = vld [vmem:[%s3798_s13 + $0x8] sm:$0xff]  }
 0x648   : > { %v2214_v14 = vadd.f32 %v2213_v12, %v2154_v27  ;;  %v3261_v13 = vpop.f32.mrb[30].mxu1 }
 0x649   : > { %v2216_v45 = vpop.f32.mrb[31].mxu1  ;;  %v2246_v44 = vadd.f32 %v3654_v29, %v2222_v18  ;;  %v2225_v37 = vadd.f32 %v3261_v13, %v2154_v27 }
 0x64a   : > { %v2244_v63 = vadd.f32 %v3653_v19, %v2214_v14  ;;  %v2217_v7 = vadd.f32 %v2216_v45, %v2154_v27 }
 0x64b   : > { %v2247_v4 = vadd.f32 %v3656_v2, %v2225_v37  ;;  %v2258_v21 = vsel %vm417_vm1, %v2246_v44, 0.0 }
 0x64c   : > { %v2245_v23 = vadd.f32 %v3655_v26, %v2217_v7  ;;  %v2252_v25 = vsel %vm417_vm1, %v2244_v63, 0.0 }
 0x64d   : > { %2253 = vadd.xlane.f32.xlu0 %v2252_v25  ;;  %v2261_v51 = vsel %vm417_vm1, %v2247_v4, 0.0 }
 0x64e   : > { %v2255_v49 = vsel %vm417_vm1, %v2245_v23, 0.0 }
 0x64f   : > { %2256 = vadd.xlane.f32.xlu1 %v2255_v49 }
 0x651   : > { %2259 = vadd.xlane.f32.xlu0 %v2258_v21 }
 0x655   : > { %2262 = vadd.xlane.f32.xlu0 %v2261_v51 }
 0x678   : > { %v3264_v30 = vpop.f32.mrb[32].mxu1 }
 0x679   : > { %v2229_v36 = vpop.f32.mrb[33].mxu1  ;;  %v2238_v3 = vadd.f32 %v3264_v30, %v2154_v27 }
 0x67a   : > { %v2230_v28 = vadd.f32 %v2229_v36, %v2154_v27  ;;  %v3265_v42 = vpop.f32.mrb[34].mxu1  ;;  %v3484_v36 = vld [vmem:[%s3803_s16] sm:$0xff]  }
 0x67b   : > { %v2232_v6 = vpop.f32.mrb[35].mxu1  ;;  %v2241_v48 = vadd.f32 %v3265_v42, %v2154_v27  ;;  %v2250_v31 = vadd.f32 %v3658_v40, %v2238_v3  ;;  %v3485_v3 = vld [vmem:[%s3803_s16 + $0x8] sm:$0xff]   ;;  %3278 = vmatprep.subr.bf16.mxu1 %v3484_v36  ;;  %v3487_v42 = vld [vmem:[%s3803_s16 + $0x18] sm:$0xff]  }
 0x67c   : > { %v2248_v9 = vadd.f32 %v3657_v52, %v2230_v28  ;;  %v2233_v50 = vadd.f32 %v2232_v6, %v2154_v27  ;;  %v3482_v27 = vld [vmem:[%s3798_s13] sm:$0xff]   ;;  %3279 = vmatpush3.bf16.msra.mxu1 %v3484_v36  ;;  %v3486_v28 = vld [vmem:[%s3803_s16 + $0x10] sm:$0xff]   ;;  %v3489_v52 = vld [vmem:[%s3803_s16 + $0x28] sm:$0xff]  }
 0x67d   : > { %v2251_v39 = vadd.f32 %v3660_v38, %v2241_v48  ;;  %v2270_v55 = vsel %vm417_vm1, %v2250_v31, 0.0  ;;  %3266 = vmatprep.subr.bf16.mxu0 %v3482_v27  ;;  %3280 = vmatprep.subr.bf16.mxu1 %v3485_v3  ;;  %v3488_v6 = vld [vmem:[%s3803_s16 + $0x20] sm:$0xff]  }
 0x67e   : > { %v2249_v53 = vadd.f32 %v3659_v22, %v2233_v50  ;;  %v2264_v58 = vsel %vm417_vm1, %v2248_v9, 0.0  ;;  %3267 = vmatpush3.bf16.msra.mxu0 %v3482_v27 }
 0x67f   : > { %2265 = vadd.xlane.f32.xlu1 %v2264_v58  ;;  %v2273_v57 = vsel %vm417_vm1, %v2251_v39, 0.0  ;;  %3268 = vmatprep.subr.bf16.mxu0 %v3483_v54 }
 0x680   : > { %v2267_v16 = vsel %vm417_vm1, %v2249_v53, 0.0  ;;  %3281 = vmatpush3.bf16.msra.mxu1 %v3485_v3 }
 0x681   : > { %2268 = vadd.xlane.f32.xlu0 %v2267_v16  ;;  %3282 = vmatprep.subr.bf16.mxu1 %v3486_v28 }
 0x682   : > { %3269 = vmatpush3.bf16.msra.mxu0 %v3483_v54 }
 0x683   : > { %2271 = vadd.xlane.f32.xlu1 %v2270_v55  ;;  %v2359_v55 = vsub.s32 4, %v3843_v24 }
 0x684   : > { %3283 = vmatpush3.bf16.msra.mxu1 %v3486_v28 }
 0x685   : > { %2274 = vadd.xlane.f32.xlu0 %v2273_v57  ;;  %3284 = vmatprep.subr.bf16.mxu1 %v3487_v42 }
 0x688   : > { %3285 = vmatpush3.bf16.msra.mxu1 %v3487_v42 }
 0x689   : > { %3286 = vmatprep.subr.bf16.mxu1 %v3488_v6 }
 0x68c   : > { %3287 = vmatpush3.bf16.msra.mxu1 %v3488_v6 }
 0x68d   : > { %3288 = vmatprep.subr.bf16.mxu1 %v3489_v52 }
 0x690   : > { %3289 = vmatpush3.bf16.msra.mxu1 %v3489_v52 }
 0x6da   : > { %v2254_v20 = vpop.xlane.xlu0 %2253 }
 0x6db   : > { %v2277_v5 = vmul.f32 0.03125, %v2254_v20  ;;  %v2360_v20 = vrot.slane %v4519_v62, %v2359_v55 }
 0x6dc   : > { %v2257_v59 = vpop.xlane.xlu1 %2256 }
 0x6dd   : > { %v4530_v56 = vsub.f32 %v2244_v63, %v2277_v5  ;;  %v2278_v41 = vmul.f32 0.03125, %v2257_v59  ;;  %v2371_v5 = vsub.s32 5, %v3843_v24 }
 0x6de   : > { %v2260_v17 = vpop.xlane.xlu0 %2259 }
 0x6df   : > { %v4532_v33 = vsub.f32 %v2245_v23, %v2278_v41  ;;  %v2279_v61 = vmul.f32 0.03125, %v2260_v17  ;;  %v2293_v15 = vmul.f32 %v4530_v56, %v4530_v56 }
 0x6e1   : > { %v4536_v43 = vsub.f32 %v2246_v44, %v2279_v61  ;;  %v2301_v60 = vsel %vm417_vm1, %v2293_v15, 0.0  ;;  %v2294_v46 = vmul.f32 %v4532_v33, %v4532_v33 }
 0x6e2   : > { %2302 = vadd.xlane.f32.xlu1 %v2301_v60  ;;  %v2263_v1 = vpop.xlane.xlu0 %2262  ;;  %v2372_v60 = vrot.slane %v4519_v62, %v2371_v5 }
 0x6e3   : > { %v2280_v32 = vmul.f32 0.03125, %v2263_v1  ;;  %v2304_v0 = vsel %vm417_vm1, %v2294_v46, 0.0  ;;  %v2295_v47 = vmul.f32 %v4536_v43, %v4536_v43 }
 0x6e4   : > { %2305 = vadd.xlane.f32.xlu0 %v2304_v0 }
 0x6e5   : > { %v4544_v10 = vsub.f32 %v2247_v4, %v2280_v32  ;;  %v2307_v35 = vsel %vm417_vm1, %v2295_v47, 0.0 }
 0x6e6   : > { %2308 = vadd.xlane.f32.xlu1 %v2307_v35 }
 0x6e7   : > { %v2296_v34 = vmul.f32 %v4544_v10, %v4544_v10 }
 0x6e9   : > { %v2310_v11 = vsel %vm417_vm1, %v2296_v34, 0.0 }
 0x6ea   : > { %2311 = vadd.xlane.f32.xlu0 %v2310_v11 }
 0x70c   : > { %v2266_v12 = vpop.xlane.xlu1 %2265 }
 0x70d   : > { %v2281_v18 = vmul.f32 0.03125, %v2266_v12 }
 0x70e   : > { %v2269_v14 = vpop.xlane.xlu0 %2268 }
 0x70f   : > { %v4552_v13 = vsub.f32 %v2248_v9, %v2281_v18  ;;  %v2282_v45 = vmul.f32 0.03125, %v2269_v14 }
 0x710   : > { %v2272_v19 = vpop.xlane.xlu1 %2271 }
 0x711   : > { %v4554_v63 = vsub.f32 %v2249_v53, %v2282_v45  ;;  %v2283_v7 = vmul.f32 0.03125, %v2272_v19  ;;  %v2297_v29 = vmul.f32 %v4552_v13, %v4552_v13 }
 0x712   : > { %v2275_v44 = vpop.xlane.xlu0 %2274 }
 0x713   : > { %v4558_v37 = vsub.f32 %v2250_v31, %v2283_v7  ;;  %v2284_v26 = vmul.f32 0.03125, %v2275_v44  ;;  %v2313_v23 = vsel %vm417_vm1, %v2297_v29, 0.0  ;;  %v2298_v25 = vmul.f32 %v4554_v63, %v4554_v63 }
 0x714   : > { %2314 = vadd.xlane.f32.xlu1 %v2313_v23 }
 0x715   : > { %v4563_v49 = vsub.f32 %v2251_v39, %v2284_v26  ;;  %v2316_v2 = vsel %vm417_vm1, %v2298_v25, 0.0  ;;  %v2299_v4 = vmul.f32 %v4558_v37, %v4558_v37 }
 0x716   : > { %2317 = vadd.xlane.f32.xlu0 %v2316_v2 }
 0x717   : > { %v2319_v21 = vsel %vm417_vm1, %v2299_v4, 0.0  ;;  %v2300_v51 = vmul.f32 %v4563_v49, %v4563_v49 }
 0x718   : > { %2320 = vadd.xlane.f32.xlu1 %v2319_v21 }
 0x719   : > { %v2322_v30 = vsel %vm417_vm1, %v2300_v51, 0.0 }
 0x71a   : > { %2323 = vadd.xlane.f32.xlu0 %v2322_v30 }
 0x76f   : > { %v2303_v9 = vpop.xlane.xlu1 %2302 }
 0x770   : > { %v2325_v48 = vmul.f32 0.03125, %v2303_v9 }
 0x771   : > { %v2306_v50 = vpop.xlane.xlu0 %2305 }
 0x772   : > { %v2333_v40 = vadd.f32 1e-05, %v2325_v48  ;;  %v2326_v31 = vmul.f32 0.03125, %v2306_v50 }
 0x773   : > { %v2309_v22 = vpop.xlane.xlu1 %2308 }
 0x774   : > { %3620 = vrsqrt.f32 %v2333_v40  ;;  %v2334_v53 = vadd.f32 1e-05, %v2326_v31  ;;  %v2327_v58 = vmul.f32 0.03125, %v2309_v22  ;;  %v3491_v31 = vld [vmem:[%s3803_s16 + $0x38] sm:$0xff]   ;;  %v2391_v22 = vsub.s32 2, %v3843_v24 }
 0x776   : > { %3622 = vrsqrt.f32 %v2334_v53  ;;  %v2335_v38 = vadd.f32 1e-05, %v2327_v58  ;;  %v2392_v53 = vrot.slane %v4519_v62, %v2391_v22 }
 0x777   : > { %v2312_v39 = vpop.xlane.xlu0 %2311 }
 0x778   : > { %3624 = vrsqrt.f32 %v2335_v38  ;;  %v2328_v16 = vmul.f32 0.03125, %v2312_v39 }
 0x77a   : > { %v2336_v57 = vadd.f32 1e-05, %v2328_v16 }
 0x77c   : > { %3626 = vrsqrt.f32 %v2336_v57 }
 0x77e   : > { %v3621_v59 = vpop.eup %3620 }
 0x77f   : > { %v2349_v41 = vmul.f32 %v3621_v59, %v4530_v56 }
 0x780   : > { %v3623_v17 = vpop.eup %3622 }
 0x781   : > { %v2350_v61 = vmul.f32 %v3623_v17, %v4532_v33  ;;  %v2361_v15 = vmul.f32 %v2360_v20, %v2349_v41 }
 0x782   : > { %v3625_v46 = vpop.eup %3624 }
 0x783   : > { %v2351_v1 = vmul.f32 %v3625_v46, %v4536_v43  ;;  %v2362_v32 = vmul.f32 %v2360_v20, %v2350_v61  ;;  %v4585_v0 = vadd.f32 %v2372_v60, %v2361_v15 }
 0x785   : > { %v4587_v47 = vadd.f32 %v2372_v60, %v2362_v32  ;;  %v2363_v34 = vmul.f32 %v2360_v20, %v2351_v1 }
 0x786   : > { %v3627_v35 = vpop.eup %3626 }
 0x787   : > { %v2352_v11 = vmul.f32 %v3627_v35, %v4544_v10  ;;  %v2381_v56 = vpack.c.bf16 %v4587_v47, %v4585_v0  ;;  %v4593_v33 = vadd.f32 %v2372_v60, %v2363_v34 }
 0x789   : > { %v2364_v27 = vmul.f32 %v2360_v20, %v2352_v11  ;;  %3270 = vmatprep.mubr.msk.bf16.mxu0 %vm417_vm1, %v2381_v56 }
 0x78b   : > { %v4595_v54 = vadd.f32 %v2372_v60, %v2364_v27 }
 0x78d   : > { %v2382_v43 = vpack.c.bf16 %v4595_v54, %v4593_v33 }
 0x78f   : > { %3271 = vmatmul.mubr.msk.bf16.vlgmr.msra.gmra.mrb[44].mxu0 %vm417_vm1, %v2382_v43 }
 0x7a1   : > { %v2315_v12 = vpop.xlane.xlu1 %2314 }
 0x7a2   : > { %v2329_v18 = vmul.f32 0.03125, %v2315_v12 }
 0x7a3   : > { %v2318_v14 = vpop.xlane.xlu0 %2317 }
 0x7a4   : > { %v2337_v45 = vadd.f32 1e-05, %v2329_v18  ;;  %v2330_v10 = vmul.f32 0.03125, %v2318_v14 }
 0x7a5   : > { %v2321_v19 = vpop.xlane.xlu1 %2320 }
 0x7a6   : > { %3628 = vrsqrt.f32 %v2337_v45  ;;  %v2338_v7 = vadd.f32 1e-05, %v2330_v10  ;;  %v2331_v29 = vmul.f32 0.03125, %v2321_v19  ;;  %v2512_v19 = vsub.s32 3, %v3843_v24 }
 0x7a7   : > { %v2324_v44 = vpop.xlane.xlu0 %2323 }
 0x7a8   : > { %3630 = vrsqrt.f32 %v2338_v7  ;;  %v2339_v26 = vadd.f32 1e-05, %v2331_v29  ;;  %v2332_v23 = vmul.f32 0.03125, %v2324_v44  ;;  %v2513_v7 = vrot.slane %v4519_v62, %v2512_v19 }
 0x7aa   : > { %3632 = vrsqrt.f32 %v2339_v26  ;;  %v2340_v25 = vadd.f32 1e-05, %v2332_v23 }
 0x7ac   : > { %3634 = vrsqrt.f32 %v2340_v25 }
 0x7b0   : > { %v3629_v2 = vpop.eup %3628 }
 0x7b1   : > { %v2353_v4 = vmul.f32 %v3629_v2, %v4552_v13 }
 0x7b2   : > { %v3631_v21 = vpop.eup %3630 }
 0x7b3   : > { %v2354_v51 = vmul.f32 %v3631_v21, %v4554_v63  ;;  %v2365_v30 = vmul.f32 %v2360_v20, %v2353_v4 }
 0x7b4   : > { %v3633_v36 = vpop.eup %3632 }
 0x7b5   : > { %v2355_v3 = vmul.f32 %v3633_v36, %v4558_v37  ;;  %v2366_v28 = vmul.f32 %v2360_v20, %v2354_v51  ;;  %v4604_v52 = vadd.f32 %v2372_v60, %v2365_v30 }
 0x7b6   : > { %v3635_v42 = vpop.eup %3634 }
 0x7b7   : > { %v2356_v6 = vmul.f32 %v3635_v42, %v4563_v49  ;;  %v4606_v9 = vadd.f32 %v2372_v60, %v2366_v28  ;;  %v2367_v48 = vmul.f32 %v2360_v20, %v2355_v3  ;;  %v3490_v49 = vld [vmem:[%s3803_s16 + $0x30] sm:$0xff]  }
 0x7b8   : > { %3290 = vmatprep.subr.bf16.mxu1 %v3490_v49 }
 0x7b9   : > { %v2383_v13 = vpack.c.bf16 %v4606_v9, %v4604_v52  ;;  %v2368_v50 = vmul.f32 %v2360_v20, %v2356_v6  ;;  %v4611_v63 = vadd.f32 %v2372_v60, %v2367_v48  ;;  %3291 = vmatpush3.bf16.msra.mxu1 %v3490_v49 }
 0x7ba   : > { %3292 = vmatprep.subr.bf16.mxu1 %v3491_v31 }
 0x7bb   : > { %3274 = vmatprep.mubr.msk.bf16.mxu0 %vm417_vm1, %v2383_v13  ;;  %v4613_v40 = vadd.f32 %v2372_v60, %v2368_v50 }
 0x7bd   : > { %v2384_v37 = vpack.c.bf16 %v4613_v40, %v4611_v63  ;;  %3293 = vmatpush3.bf16.msra.mxu1 %v3491_v31 }
 0x7bf   : > { %3275 = vmatmul.mubr.msk.bf16.gmra.mrb[48].mxu0 %vm417_vm1, %v2384_v37 }
 0x862   : > { %v3272_v58 = vpop.f32.mrb[44].mxu0 }
 0x863   : > { %v2460_v38 = vadd.f32 %v3272_v58, %v2392_v53  ;;  %v2451_v39 = vpop.f32.mrb[45].mxu0 }
 0x864   : > { %v2452_v16 = vadd.f32 %v2451_v39, %v2392_v53  ;;  %v3273_v55 = vpop.f32.mrb[46].mxu0 }
 0x865   : > { %v2463_v57 = vadd.f32 %v3273_v55, %v2392_v53  ;;  %v2454_v20 = vpop.f32.mrb[47].mxu0  ;;  %v2484_v59 = vmax.f32 %v2460_v38, 0.0 }
 0x866   : > { %v2455_v5 = vadd.f32 %v2454_v20, %v2392_v53  ;;  %v2482_v17 = vmax.f32 %v2452_v16, 0.0 }
 0x867   : > { %v2485_v41 = vmax.f32 %v2463_v57, 0.0 }
 0x868   : > { %v2483_v61 = vmax.f32 %v2455_v5, 0.0 }
 0x869   : > { %v2491_v15 = vpack.c.bf16 %v2485_v41, %v2484_v59 }
 0x86a   : > { %v2490_v60 = vpack.c.bf16 %v2483_v61, %v2482_v17 }
 0x86c   : > { %3294 = vmatprep.mubr.bf16.mxu1 %v2490_v60 }
 0x86d   : > { %3295 = vmatmul.mubr.bf16.vlgmr.msra.gmra.mrb[36].mxu1 %v2491_v15 }
 0x892   : > { %v3276_v46 = vpop.f32.mrb[48].mxu0 }
 0x893   : > { %v2476_v1 = vadd.f32 %v3276_v46, %v2392_v53  ;;  %v2467_v32 = vpop.f32.mrb[49].mxu0 }
 0x894   : > { %v2468_v35 = vadd.f32 %v2467_v32, %v2392_v53  ;;  %v3277_v34 = vpop.f32.mrb[50].mxu0 }
 0x895   : > { %v2479_v11 = vadd.f32 %v3277_v34, %v2392_v53  ;;  %v2470_v56 = vpop.f32.mrb[51].mxu0  ;;  %v2488_v43 = vmax.f32 %v2476_v1, 0.0 }
 0x896   : > { %v2471_v27 = vadd.f32 %v2470_v56, %v2392_v53  ;;  %v2486_v18 = vmax.f32 %v2468_v35, 0.0 }
 0x897   : > { %v2489_v12 = vmax.f32 %v2479_v11, 0.0 }
 0x898   : > { %v2487_v14 = vmax.f32 %v2471_v27, 0.0 }
 0x899   : > { %v2493_v45 = vpack.c.bf16 %v2489_v12, %v2488_v43 }
 0x89a   : > { %v2492_v10 = vpack.c.bf16 %v2487_v14, %v2486_v18 }
 0x89c   : > { %3298 = vmatprep.mubr.bf16.mxu1 %v2492_v10 }
 0x89d   : > { %3299 = vmatmul.mubr.bf16.gmra.mrb[40].mxu1 %v2493_v45 }
 0x940   : > { %v3296_v29 = vpop.f32.mrb[36].mxu1 }
 0x941   : > { %v2605_v44 = vadd.f32 %v3296_v29, %v2513_v7  ;;  %v2596_v26 = vpop.f32.mrb[37].mxu1 }
 0x942   : > { %v2597_v23 = vadd.f32 %v2596_v26, %v2513_v7  ;;  %v3297_v25 = vpop.f32.mrb[38].mxu1 }
 0x943   : > { %v2629_v2 = vadd.f32 %v2605_v44, %v4593_v33  ;;  %v2608_v4 = vadd.f32 %v3297_v25, %v2513_v7  ;;  %v2599_v21 = vpop.f32.mrb[39].mxu1 }
 0x944   : > { %v2600_v51 = vadd.f32 %v2599_v21, %v2513_v7  ;;  %v2627_v30 = vadd.f32 %v2597_v23, %v4585_v0 }
 0x945   : > { %v2630_v36 = vadd.f32 %v2608_v4, %v4595_v54  ;;  %v2641_v3 = vsel %vm417_vm1, %v2629_v2, 0.0 }
 0x946   : > { %2642 = vadd.xlane.f32.xlu1 %v2641_v3  ;;  %v2628_v28 = vadd.f32 %v2600_v51, %v4587_v47  ;;  %v2635_v6 = vsel %vm417_vm1, %v2627_v30, 0.0 }
 0x947   : > { %v2644_v42 = vsel %vm417_vm1, %v2630_v36, 0.0 }
 0x948   : > { %2645 = vadd.xlane.f32.xlu0 %v2644_v42  ;;  %v2638_v33 = vsel %vm417_vm1, %v2628_v28, 0.0 }
 0x94a   : > { %2636 = vadd.xlane.f32.xlu1 %v2635_v6 }
 0x94c   : > { %2639 = vadd.xlane.f32.xlu0 %v2638_v33 }
 0x970   : > { %v3300_v48 = vpop.f32.mrb[40].mxu1 }
 0x971   : > { %v2612_v13 = vpop.f32.mrb[41].mxu1  ;;  %v2621_v50 = vadd.f32 %v3300_v48, %v2513_v7 }
 0x972   : > { %v2613_v0 = vadd.f32 %v2612_v13, %v2513_v7  ;;  %v3301_v37 = vpop.f32.mrb[42].mxu1 }
 0x973   : > { %v2615_v54 = vpop.f32.mrb[43].mxu1  ;;  %v2624_v31 = vadd.f32 %v3301_v37, %v2513_v7  ;;  %v2633_v47 = vadd.f32 %v2621_v50, %v4611_v63 }
 0x974   : > { %v2631_v49 = vadd.f32 %v2613_v0, %v4604_v52  ;;  %v2616_v22 = vadd.f32 %v2615_v54, %v2513_v7 }
 0x975   : > { %v2634_v38 = vadd.f32 %v2624_v31, %v4613_v40  ;;  %v2653_v16 = vsel %vm417_vm1, %v2633_v47, 0.0  ;;  %v2741_v31 = vsub.s32 6, %v3843_v24 }
 0x976   : > { %v2632_v53 = vadd.f32 %v2616_v22, %v4606_v9  ;;  %v2647_v58 = vsel %vm417_vm1, %v2631_v49, 0.0  ;;  %v2753_v22 = vsub.s32 7, %v3843_v24 }
 0x977   : > { %2648 = vadd.xlane.f32.xlu1 %v2647_v58  ;;  %v2656_v55 = vsel %vm417_vm1, %v2634_v38, 0.0 }
 0x978   : > { %v2650_v39 = vsel %vm417_vm1, %v2632_v53, 0.0  ;;  %v2754_v58 = vrot.slane %v4519_v62, %v2753_v22 }
 0x979   : > { %2651 = vadd.xlane.f32.xlu0 %v2650_v39 }
 0x97b   : > { %2654 = vadd.xlane.f32.xlu1 %v2653_v16 }
 0x97d   : > { %2657 = vadd.xlane.f32.xlu0 %v2656_v55 }
 0x9d3   : > { %v2643_v52 = vpop.xlane.xlu1 %2642 }
 0x9d4   : > { %v2661_v57 = vmul.f32 0.03125, %v2643_v52 }
 0x9d5   : > { %v2646_v20 = vpop.xlane.xlu0 %2645 }
 0x9d6   : > { %v4640_v63 = vsub.f32 %v2629_v2, %v2661_v57  ;;  %v2662_v9 = vmul.f32 0.03125, %v2646_v20 }
 0x9d7   : > { %v2637_v5 = vpop.xlane.xlu1 %2636 }
 0x9d8   : > { %v4642_v59 = vsub.f32 %v2630_v36, %v2662_v9  ;;  %v2659_v41 = vmul.f32 0.03125, %v2637_v5  ;;  %v2677_v40 = vmul.f32 %v4640_v63, %v4640_v63 }
 0x9d9   : > { %v2640_v17 = vpop.xlane.xlu0 %2639 }
 0x9da   : > { %v4646_v61 = vsub.f32 %v2627_v30, %v2659_v41  ;;  %v2660_v15 = vmul.f32 0.03125, %v2640_v17  ;;  %v2689_v60 = vsel %vm417_vm1, %v2677_v40, 0.0  ;;  %v2678_v46 = vmul.f32 %v4642_v59, %v4642_v59 }
 0x9db   : > { %2690 = vadd.xlane.f32.xlu1 %v2689_v60 }
 0x9dc   : > { %v4651_v1 = vsub.f32 %v2628_v28, %v2660_v15  ;;  %v2692_v32 = vsel %vm417_vm1, %v2678_v46, 0.0  ;;  %v2675_v35 = vmul.f32 %v4646_v61, %v4646_v61 }
 0x9dd   : > { %2693 = vadd.xlane.f32.xlu0 %v2692_v32 }
 0x9de   : > { %v2683_v34 = vsel %vm417_vm1, %v2675_v35, 0.0  ;;  %v2676_v11 = vmul.f32 %v4651_v1, %v4651_v1 }
 0x9df   : > { %2684 = vadd.xlane.f32.xlu1 %v2683_v34 }
 0x9e0   : > { %v2686_v56 = vsel %vm417_vm1, %v2676_v11, 0.0 }
 0x9e1   : > { %2687 = vadd.xlane.f32.xlu0 %v2686_v56 }
 0xa04   : > { %v2649_v27 = vpop.xlane.xlu1 %2648 }
 0xa05   : > { %v2663_v43 = vmul.f32 0.03125, %v2649_v27 }
 0xa06   : > { %v2652_v12 = vpop.xlane.xlu0 %2651 }
 0xa07   : > { %v4660_v18 = vsub.f32 %v2631_v49, %v2663_v43  ;;  %v2664_v14 = vmul.f32 0.03125, %v2652_v12 }
 0xa08   : > { %v2655_v45 = vpop.xlane.xlu1 %2654 }
 0xa09   : > { %v4662_v10 = vsub.f32 %v2632_v53, %v2664_v14  ;;  %v2665_v19 = vmul.f32 0.03125, %v2655_v45  ;;  %v2679_v7 = vmul.f32 %v4660_v18, %v4660_v18 }
 0xa0a   : > { %v2658_v29 = vpop.xlane.xlu0 %2657 }
 0xa0b   : > { %v4666_v44 = vsub.f32 %v2633_v47, %v2665_v19  ;;  %v2666_v26 = vmul.f32 0.03125, %v2658_v29  ;;  %v2695_v23 = vsel %vm417_vm1, %v2679_v7, 0.0  ;;  %v2680_v25 = vmul.f32 %v4662_v10, %v4662_v10 }
 0xa0c   : > { %2696 = vadd.xlane.f32.xlu1 %v2695_v23  ;;  %v2742_v47 = vrot.slane %v4519_v62, %v2741_v31 }
 0xa0d   : > { %v4671_v2 = vsub.f32 %v2634_v38, %v2666_v26  ;;  %v2698_v4 = vsel %vm417_vm1, %v2680_v25, 0.0  ;;  %v2681_v21 = vmul.f32 %v4666_v44, %v4666_v44 }
 0xa0e   : > { %2699 = vadd.xlane.f32.xlu0 %v2698_v4 }
 0xa0f   : > { %v2701_v51 = vsel %vm417_vm1, %v2681_v21, 0.0  ;;  %v2682_v30 = vmul.f32 %v4671_v2, %v4671_v2 }
 0xa10   : > { %2702 = vadd.xlane.f32.xlu1 %v2701_v51 }
 0xa11   : > { %v2704_v36 = vsel %vm417_vm1, %v2682_v30, 0.0 }
 0xa12   : > { %2705 = vadd.xlane.f32.xlu0 %v2704_v36 }
 0xa68   : > { %v2691_v3 = vpop.xlane.xlu1 %2690 }
 0xa69   : > { %v2709_v28 = vmul.f32 0.03125, %v2691_v3 }
 0xa6a   : > { %v2694_v42 = vpop.xlane.xlu0 %2693 }
 0xa6b   : > { %v2717_v6 = vadd.f32 1e-05, %v2709_v28  ;;  %v2710_v33 = vmul.f32 0.03125, %v2694_v42 }
 0xa6c   : > { %v2685_v48 = vpop.xlane.xlu1 %2684 }
 0xa6d   : > { %3636 = vrsqrt.f32 %v2717_v6  ;;  %v2718_v13 = vadd.f32 1e-05, %v2710_v33  ;;  %v2707_v50 = vmul.f32 0.03125, %v2685_v48 }
 0xa6e   : > { %v2688_v0 = vpop.xlane.xlu0 %2687 }
 0xa6f   : > { %3638 = vrsqrt.f32 %v2718_v13  ;;  %v2715_v37 = vadd.f32 1e-05, %v2707_v50  ;;  %v2708_v54 = vmul.f32 0.03125, %v2688_v0 }
 0xa71   : > { %3640 = vrsqrt.f32 %v2715_v37  ;;  %v2716_v49 = vadd.f32 1e-05, %v2708_v54 }
 0xa73   : > { %3642 = vrsqrt.f32 %v2716_v49 }
 0xa77   : > { %v3637_v53 = vpop.eup %3636 }
 0xa78   : > { %v2733_v38 = vmul.f32 %v3637_v53, %v4640_v63 }
 0xa79   : > { %v3639_v39 = vpop.eup %3638 }
 0xa7a   : > { %v2745_v16 = vmul.f32 %v2742_v47, %v2733_v38  ;;  %v2734_v55 = vmul.f32 %v3639_v39, %v4642_v59 }
 0xa7b   : > { %v3641_v52 = vpop.eup %3640 }
 0xa7c   : > { %v2757_v57 = vadd.f32 %v2754_v58, %v2745_v16  ;;  %v2746_v20 = vmul.f32 %v2742_v47, %v2734_v55  ;;  %v2731_v9 = vmul.f32 %v3641_v52, %v4646_v61 }
 0xa7d   : > { %v3643_v5 = vpop.eup %3642 }
 0xa7e   : > { %2765 = vst.msk [vmem:[#allocation2 + $0x10] sm:$0xff] %vm417_vm1, %v2757_v57  ;;  %v2758_v24 = vadd.f32 %v2754_v58, %v2746_v20  ;;  %v2743_v41 = vmul.f32 %v2742_v47, %v2731_v9  ;;  %v2732_v40 = vmul.f32 %v3643_v5, %v4651_v1 }
 0xa80   : > { %2766 = vst.msk [vmem:[#allocation2 + $0x18] sm:$0xff] %vm417_vm1, %v2758_v24  ;;  %v2755_v62 = vadd.f32 %v2754_v58, %v2743_v41  ;;  %v2744_v63 = vmul.f32 %v2742_v47, %v2732_v40 }
 0xa82   : > { %2763 = vst.msk [vmem:[#allocation2] sm:$0xff] %vm417_vm1, %v2755_v62  ;;  %v2756_v17 = vadd.f32 %v2754_v58, %v2744_v63 }
 0xa84   : > { %2764 = vst.msk [vmem:[#allocation2 + $0x8] sm:$0xff] %vm417_vm1, %v2756_v17 }
 0xa99   : > { %v2697_v59 = vpop.xlane.xlu1 %2696 }
 0xa9a   : > { %v2711_v15 = vmul.f32 0.03125, %v2697_v59 }
 0xa9b   : > { %v2700_v60 = vpop.xlane.xlu0 %2699 }
 0xa9c   : > { %v2719_v61 = vadd.f32 1e-05, %v2711_v15  ;;  %v2712_v46 = vmul.f32 0.03125, %v2700_v60 }
 0xa9d   : > { %v2703_v32 = vpop.xlane.xlu1 %2702 }
 0xa9e   : > { %3644 = vrsqrt.f32 %v2719_v61  ;;  %v2720_v35 = vadd.f32 1e-05, %v2712_v46  ;;  %v2713_v34 = vmul.f32 0.03125, %v2703_v32 }
 0xa9f   : > { %v2706_v11 = vpop.xlane.xlu0 %2705 }
 0xaa0   : > { %3646 = vrsqrt.f32 %v2720_v35  ;;  %v2721_v1 = vadd.f32 1e-05, %v2713_v34  ;;  %v2714_v56 = vmul.f32 0.03125, %v2706_v11 }
 0xaa2   : > { %3648 = vrsqrt.f32 %v2721_v1  ;;  %v2722_v27 = vadd.f32 1e-05, %v2714_v56 }
 0xaa4   : > { %3650 = vrsqrt.f32 %v2722_v27 }
 0xaa8   : > { %v3645_v43 = vpop.eup %3644 }
 0xaa9   : > { %v2735_v12 = vmul.f32 %v3645_v43, %v4660_v18 }
 0xaaa   : > { %v3647_v14 = vpop.eup %3646 }
 0xaab   : > { %v2747_v45 = vmul.f32 %v2742_v47, %v2735_v12  ;;  %v2736_v19 = vmul.f32 %v3647_v14, %v4662_v10  ;;  %v2776_v10 = vsel (!%p3010_p6), %vm2775_vm6, %v2755_v62, 0.0 }
 0xaac   : > { %v3649_v7 = vpop.eup %3648  ;;  %2777 = vadd.xlane.f32.xlu0 (!%p3010_p6), %v2776_v10 }
 0xaad   : > { %v2759_v29 = vadd.f32 %v2754_v58, %v2747_v45  ;;  %v2748_v26 = vmul.f32 %v2742_v47, %v2736_v19  ;;  %v2737_v23 = vmul.f32 %v3649_v7, %v4666_v44 }
 0xaae   : > { %v3651_v25 = vpop.eup %3650 }
 0xaaf   : > { %2767 = vst.msk [vmem:[#allocation2 + $0x20] sm:$0xff] %vm417_vm1, %v2759_v29  ;;  %v2760_v4 = vadd.f32 %v2754_v58, %v2748_v26  ;;  %v2749_v21 = vmul.f32 %v2742_v47, %v2737_v23  ;;  %v2738_v51 = vmul.f32 %v3651_v25, %v4671_v2  ;;  %2774 = sbr.rel (%p3010_p6) target bundleno = 3049 (0xbe9), region = 52  ;;  %v2779_v44 = vsel (!%p3010_p6), %vm2775_vm6, %v2759_v29, 0.0 }
 0xab0   : > { %2780 = vadd.xlane.f32.xlu0 (!%p3010_p6), %v2779_v44 }
 0xab1   : > { %2768 = vst.msk [vmem:[#allocation2 + $0x28] sm:$0xff] %vm417_vm1, %v2760_v4  ;;  %v2761_v30 = vadd.f32 %v2754_v58, %v2749_v21  ;;  %v2750_v18 = vmul.f32 %v2742_v47, %v2738_v51 }
 0xab3   : > { %2769 = vst.msk [vmem:[#allocation2 + $0x30] sm:$0xff] %vm417_vm1, %v2761_v30  ;;  %v2762_v36 = vadd.f32 %v2754_v58, %v2750_v18  ;;  %v2805_v58 = vrot.slane (!%p3010_p6), %v3836_v8, 1 }
 0xab5   : > { %2770 = vst.msk [vmem:[#allocation2 + $0x38] sm:$0xff] %vm417_vm1, %v2762_v36 }
 0xb39   : > { %v2778_v2 = vpop.xlane.xlu0 %2777 }
 0xb3a   : > { %v2782_v3 = vmul.f32 0.03125, %v2778_v2 }
 0xb3c   : > { %v2784_v28 = vsub.f32 %v2755_v62, %v2782_v3 }
 0xb3d   : > { %v2781_v42 = vpop.xlane.xlu0 %2780 }
 0xb3e   : > { %v2783_v6 = vmul.f32 0.03125, %v2781_v42  ;;  %v2786_v33 = vmul.f32 %v2784_v28, %v2784_v28 }
 0xb40   : > { %v2785_v48 = vsub.f32 %v2759_v29, %v2783_v6  ;;  %v2788_v13 = vsel %vm2775_vm6, %v2786_v33, 0.0 }
 0xb41   : > { %2789 = vadd.xlane.f32.xlu1 %v2788_v13 }
 0xb42   : > { %v2787_v50 = vmul.f32 %v2785_v48, %v2785_v48 }
 0xb44   : > { %v2791_v0 = vsel %vm2775_vm6, %v2787_v50, 0.0 }
 0xb45   : > { %2792 = vadd.xlane.f32.xlu1 %v2791_v0 }
 0xbce   : > { %v2790_v37 = vpop.xlane.xlu1 %2789 }
 0xbcf   : > { %v2794_v54 = vmul.f32 0.03125, %v2790_v37 }
 0xbd1   : > { %v2796_v49 = vadd.f32 1e-05, %v2794_v54 }
 0xbd2   : > { %v2793_v31 = vpop.xlane.xlu1 %2792 }
 0xbd3   : > { %3661 = vrsqrt.f32 %v2796_v49  ;;  %v2795_v22 = vmul.f32 0.03125, %v2793_v31 }
 0xbd5   : > { %v2797_v47 = vadd.f32 1e-05, %v2795_v22 }
 0xbd7   : > { %3663 = vrsqrt.f32 %v2797_v47 }
 0xbdd   : > { %v3662_v53 = vpop.eup %3661 }
 0xbde   : > { %v2800_v38 = vmul.f32 %v3662_v53, %v2784_v28 }
 0xbe0   : > { %v2802_v39 = vmul.f32 %v2800_v38, %v3836_v8 }
 0xbe1   : > { %v3664_v16 = vpop.eup %3663 }
 0xbe2   : > { %v2807_v55 = vadd.f32 %v2805_v58, %v2802_v39  ;;  %v2801_v52 = vmul.f32 %v3664_v16, %v2785_v48 }
 0xbe4   : > { %2809 = vst.msk [vmem:[#allocation3] sm:$0x1] %vm2775_vm6, %v2807_v55  ;;  %v2803_v57 = vmul.f32 %v2801_v52, %v3836_v8 }
 0xbe6   : > { %v2808_v20 = vadd.f32 %v2805_v58, %v2803_v57 }
 0xbe8   : > { %2810 = vst.msk [vmem:[#allocation3 + $0x1] sm:$0x1] %vm2775_vm6, %v2808_v20 }
 0xbe9 PF: > { %p4712_p7 = scmp.eq.s32.totalorder %s2936_s24, 1  ;;  %s3727_s10 = smov [#allocation3]  }
 0xbea   : > { %s2820_s13 = sshll.u32 %s3727_s10, 4  ;;  %s2821_s13 = int_to_ptr.vmem [resolvable:$true] %s2820_s13 }
 0xbeb   : > { %s3665_s16 = scalar_lea.vmem %s2821_s13, 32  ;;  %p3672_p11 = scmp.lt.s32.totalorder %s2821_s13, %s2821_s13 }
 0xbec   : > { %p3666_p8 = scmp.ne.s32.totalorder %s2821_s13, %s3665_s16  ;;  %p3673_p12 = scmp.lt.s32.totalorder %s3665_s16, %s3665_s16 }
 0xbee   : > { %p3667_p9 = pnand %p3666_p8, %p4712_p7  ;;  %p3674_p13 = por %p3673_p12, %p3672_p11 }
 0xbf0   : > { %p3668_p10 = pneg %p3667_p9 }
 0xbf2   : > { %p3675_p0 = pnand %p3674_p13, %p3668_p10 }
 0xbf4   : > { %3678 = shalt.err (!%p3675_p0)
}
 0xbf5   : > { %s3679_s24 = scalar_lea.hbm %s4755_s6, 32 }
 0xbf6   : > { %p3680_p1 = scmp.ne.s32.totalorder %s4755_s6, %s3679_s24  ;;  %p3685_p4 = scmp.lt.u32.totalorder %s3679_s24, %s4755_s6 }
 0xbf8   : > { %p3681_p2 = pnand %p3680_p1, %p4712_p7 }
 0xbfa   : > { %p3682_p3 = pneg %p3681_p2 }
 0xbfc   : > { %p3687_p5 = pnand %p3685_p4, %p3682_p3 }
 0xbfe   : > { %3690 = shalt.err (!%p3687_p5)
}
 0xbff   : > { %s3728_s20 = smov 1  }
 0xc00   : > { %3319 = dma.vmem_to_hbm [thread:$0]  (%p4712_p7), %s2821_s13, 32, %s4755_s6, [#allocation4], %s3725_s9, %s3725_s9, %s3728_s20  }
 0xc01   : > { %3704 = dma.done.wait (%p4712_p7), [#allocation4], 32  }
 0xc02   : > { %3706 = vsyncadd (%p4712_p7), [#allocation4], 4294967264 }
 0xc03 PF: > { %s17_s23 = sadd.s32 1, %s3717_s23   ;;  %s4757_s21 = smov %s3713_s22 }
 0xc04   : > { %p14_p6 = scmp.ge.s32.totalorder %s17_s23, 4   ;;  %s4758_s22 = smov %s4760_s25 }
 0xc06   :  { %16 = sbr.rel (!%p14_p6) target bundleno = 2 (0x2), region = 95 }
 0xc0d   :  { %2836 = vsyncpa [#allocation4], 1 }
 0xc0e   :  { %2838 = vsyncpa [#allocation4 + $0x1], 1 }

</bundles_post_ra>
